<compile_context>
chip_gen: v5e
topology: v5e:2x2
jax: 0.10.0
libtpu: 0.0.40
codegen_flags: <defaults>
</compile_context>

<pallas_src>
import jax
import jax.numpy as jnp
from jax import lax
from jax.experimental import pallas as pl
from jax.experimental.pallas import tpu as pltpu


KERNEL_SIZE = 7
PAD = 3  # padding = 3 for kernel_size 7 (per the module's assert)


# ---------------------------------------------------------------------------
# Host-side precompute: fold the conv into dense flattened operators.
# ---------------------------------------------------------------------------
def _conv_as_dense_operators(conv_weight, H, W):
    """Fold conv2d(in=2, out=1, KxK, padding=K//2, no bias) into dense matrices.

    Returns A of shape (2, N, N) with N = H*W such that, for row-major
    flattened planes,  conv_out_flat = avg_flat @ A[0] + max_flat @ A[1].
    A[c][q, p] is the weight with which source pixel q contributes to output
    pixel p; zero padding is handled by simply omitting out-of-image sources.
    """
    K = conv_weight.shape[-1]
    P = (K - 1) // 2
    N = H * W
    w = conv_weight.astype(jnp.float32).reshape(2, K * K)   # (2, K*K)

    pos = jnp.arange(N, dtype=jnp.int32)
    row = pos // W
    col = pos % W
    dy = row[:, None] - row[None, :]        # source(q) row - output(p) row
    dx = col[:, None] - col[None, :]        # source(q) col - output(p) col
    valid = (jnp.abs(dy) <= P) & (jnp.abs(dx) <= P)
    kidx = jnp.clip((dy + P) * K + (dx + P), 0, K * K - 1)   # kernel tap index
    taps = w[:, kidx]                       # (2, N, N)
    return jnp.where(valid[None], taps, 0.0)


def _pick_batch_tile(B, bytes_per_batch, budget=2 * 1024 * 1024):
    """Largest divisor of B whose (bt, C, H*W) block stays under `budget`."""
    bt = 1
    for d in range(1, B + 1):
        if B % d == 0 and d * bytes_per_batch <= budget:
            bt = d
    return bt


# ---------------------------------------------------------------------------
# Kernel
# ---------------------------------------------------------------------------
def _precise_matmul(v, m_hi, m_lo):
    """~f32-accurate (v @ (m_hi + m_lo)) independent of MXU f32 pass mode.

    m_hi holds bf16-representable values (as f32) and m_lo the f32 residual;
    v is split the same way in-kernel, so every MXU pass sees exactly
    representable bf16 operands while accumulation stays in f32.
    """
    v_hi = v.astype(jnp.bfloat16).astype(jnp.float32)
    v_lo = v - v_hi
    dot = lambda a, b: jnp.dot(a, b, preferred_element_type=jnp.float32)
    return dot(v_hi, m_hi) + dot(v_lo, m_hi) + dot(v_hi, m_lo)


def spatial_attention_kernel(x_ref, a_hi_ref, a_lo_ref, o_ref):
    """One (bt, C, HW) lane-dense tile per grid step.

    x_ref    : (bt, C, HW) input activations (HW on the lane axis).
    a_hi_ref : (2, HW, HW) bf16-exact part of the dense conv operators.
    a_lo_ref : (2, HW, HW) f32 residual part.
    o_ref    : (bt, C, HW) output.
    """
    x = x_ref[...]
    xf = x.astype(jnp.float32)                 # no-op for f32 activations

    # Channel statistics (reduction over the sublane axis C).
    avg = jnp.mean(xf, axis=1)                 # (bt, HW) f32
    mx = jnp.max(xf, axis=1)                   # (bt, HW) f32

    # 7x7 "same" conv over the [avg, max] stack as two MXU matmuls.
    conv = (_precise_matmul(avg, a_hi_ref[0], a_lo_ref[0]) +
            _precise_matmul(mx, a_hi_ref[1], a_lo_ref[1]))     # (bt, HW) f32

    attn = jax.nn.sigmoid(conv)                # (bt, HW) f32

    # Lane-dense broadcast multiply + store; only the small attention plane is
    # cast so non-f32 activations are multiplied in their native dtype.
    o_ref[...] = (x * attn[:, None, :].astype(x.dtype)).astype(o_ref.dtype)


# ---------------------------------------------------------------------------
# Wrapper
# ---------------------------------------------------------------------------
def spatial_attention(x, conv_weight):
    """x: (B, C, H, W); conv_weight: (1, 2, K, K), K == KERNEL_SIZE."""
    B, C, H, W = x.shape
    N = H * W

    # Host precompute: dense conv operators + their bf16 hi / f32 lo split.
    a_op = _conv_as_dense_operators(conv_weight, H, W)          # (2, N, N)
    a_hi = a_op.astype(jnp.bfloat16).astype(jnp.float32)
    a_lo = a_op - a_hi

    # Lane-dense layout: flatten H*W onto the lane axis (free for NCHW).
    x_flat = x.reshape(B, C, N)

    # Fold small batch elements into one grid step; keep blocks well inside
    # scoped VMEM on every generation (v5e 16 MiB default scope, v7x 64 MiB
    # physical) accounting for in+out double buffering.
    bt = _pick_batch_tile(B, C * N * x.dtype.itemsize)
    grid = (B // bt,)

    out_flat = pl.pallas_call(
        spatial_attention_kernel,
        out_shape=jax.ShapeDtypeStruct((B, C, N), x.dtype),
        grid=grid,
        in_specs=[
            pl.BlockSpec((bt, C, N), lambda b: (b, 0, 0)),      # activations
            pl.BlockSpec((2, N, N), lambda b: (0, 0, 0)),       # conv op (hi)
            pl.BlockSpec((2, N, N), lambda b: (0, 0, 0)),       # conv op (lo)
        ],
        out_specs=pl.BlockSpec((bt, C, N), lambda b: (b, 0, 0)),
        compiler_params=pltpu.CompilerParams(
            dimension_semantics=("parallel",)),
    )(x_flat, a_hi, a_lo)
    return out_flat.reshape(B, C, H, W)


# ---------------------------------------------------------------------------
# Pure-JAX reference (matches the PyTorch forward)
# ---------------------------------------------------------------------------
def spatial_attention_ref(x, conv_weight):
    avg = jnp.mean(x, axis=1, keepdims=True)
    mx = jnp.max(x, axis=1, keepdims=True)
    stacked = jnp.concatenate([avg, mx], axis=1)                # (B, 2, H, W)
    a = lax.conv_general_dilated(
        stacked, conv_weight,
        window_strides=(1, 1), padding=[(PAD, PAD), (PAD, PAD)],
        dimension_numbers=("NCHW", "OIHW", "NCHW"),
        precision=lax.Precision.HIGHEST)
    return jax.nn.sigmoid(a) * x


if __name__ == "__main__":
    key = jax.random.PRNGKey(0)
    kx, kw = jax.random.split(key)

    B, C, H, W = 2, 4, 16, 16
    x = jax.random.normal(kx, (B, C, H, W), dtype=jnp.float32)
    # Conv weight, shape (out=1, in=2, 7, 7), no bias.
    conv_w = 0.1 * jax.random.normal(kw, (1, 2, KERNEL_SIZE, KERNEL_SIZE),
                                     dtype=jnp.float32)

    out = spatial_attention(x, conv_w)
    out = jax.block_until_ready(out)

    ref = spatial_attention_ref(x, conv_w)
    assert out.shape == (B, C, H, W)
    # Tolerance leaves headroom for hardware transcendental (sigmoid) and
    # MXU pass-mode differences; the hi/lo split keeps the conv itself ~f32.
    max_err = float(jnp.max(jnp.abs(out - ref)))
    assert jnp.allclose(out, ref, atol=1e-3, rtol=1e-3), (
        f"mismatch vs reference: max|err|={max_err}")

    print("KERNEL_OK")
</pallas_src>

<mosaic_0001>
module attributes {stable_mosaic.version = 11 : i64} {
  func.func @spatial_attention_kernel(%arg0: i32, %arg1: memref<2x4x256xf32, #tpu.memory_space<vmem>>, %arg2: memref<2x256x256xf32, #tpu.memory_space<vmem>>, %arg3: memref<2x256x256xf32, #tpu.memory_space<vmem>>, %arg4: memref<2x4x256xf32, #tpu.memory_space<vmem>>) attributes {dimension_semantics = [#tpu.dimension_semantics<parallel>], iteration_bounds = array<i64: 1>, scalar_prefetch = 0 : i64, scratch_operands = 0 : i64, tpu.core_type = #tpu.core_type<tc>, window_params = [{transform_indices = @transform_0, window_bounds = array<i64: 2, 4, 256>}, {pipeline_mode = #tpu.pipeline_mode<synchronous>, transform_indices = @transform_1, window_bounds = array<i64: 2, 256, 256>}, {pipeline_mode = #tpu.pipeline_mode<synchronous>, transform_indices = @transform_2, window_bounds = array<i64: 2, 256, 256>}, {transform_indices = @transform_3, window_bounds = array<i64: 2, 4, 256>}]} {
    %c0 = arith.constant 0 : index
    %c0_0 = arith.constant 0 : index
    %c0_1 = arith.constant 0 : index
    %0 = vector.load %arg1[%c0, %c0_0, %c0_1] : memref<2x4x256xf32, #tpu.memory_space<vmem>>, vector<2x4x256xf32>
    %cst = arith.constant dense<0.000000e+00> : vector<2x256xf32>
    %1 = vector.multi_reduction <add>, %0, %cst [1] : vector<2x4x256xf32> to vector<2x256xf32>
    %cst_2 = arith.constant 4.000000e+00 : f32
    %2 = vector.broadcast %cst_2 : f32 to vector<2x256xf32>
    %3 = arith.divf %1, %2 : vector<2x256xf32>
    %cst_3 = arith.constant dense<0xFF800000> : vector<2x256xf32>
    %4 = vector.multi_reduction <maximumf>, %0, %cst_3 [1] : vector<2x4x256xf32> to vector<2x256xf32>
    %c0_4 = arith.constant 0 : index
    %c0_5 = arith.constant 0 : index
    %c0_6 = arith.constant 0 : index
    %5 = vector.load %arg2[%c0_4, %c0_5, %c0_6] : memref<2x256x256xf32, #tpu.memory_space<vmem>>, vector<1x256x256xf32>
    %6 = vector.shape_cast %5 : vector<1x256x256xf32> to vector<256x256xf32>
    %c0_7 = arith.constant 0 : index
    %c0_8 = arith.constant 0 : index
    %c0_9 = arith.constant 0 : index
    %7 = vector.load %arg3[%c0_7, %c0_8, %c0_9] : memref<2x256x256xf32, #tpu.memory_space<vmem>>, vector<1x256x256xf32>
    %8 = vector.shape_cast %7 : vector<1x256x256xf32> to vector<256x256xf32>
    %9 = arith.truncf %3 : vector<2x256xf32> to vector<2x256xbf16>
    %10 = arith.extf %9 : vector<2x256xbf16> to vector<2x256xf32>
    %11 = arith.subf %3, %10 : vector<2x256xf32>
    %cst_10 = arith.constant dense<0.000000e+00> : vector<2x256xf32>
    %12 = tpu.matmul %10, %6, %cst_10 {dimension_numbers = #tpu.dot_dimension_numbers<[1], [0], [0], [1], [0, 0, 1, 1], [], []>} : vector<2x256xf32>, vector<256x256xf32>, vector<2x256xf32> -> vector<2x256xf32>
    %cst_11 = arith.constant dense<0.000000e+00> : vector<2x256xf32>
    %13 = tpu.matmul %11, %6, %cst_11 {dimension_numbers = #tpu.dot_dimension_numbers<[1], [0], [0], [1], [0, 0, 1, 1], [], []>} : vector<2x256xf32>, vector<256x256xf32>, vector<2x256xf32> -> vector<2x256xf32>
    %14 = arith.addf %12, %13 : vector<2x256xf32>
    %cst_12 = arith.constant dense<0.000000e+00> : vector<2x256xf32>
    %15 = tpu.matmul %10, %8, %cst_12 {dimension_numbers = #tpu.dot_dimension_numbers<[1], [0], [0], [1], [0, 0, 1, 1], [], []>} : vector<2x256xf32>, vector<256x256xf32>, vector<2x256xf32> -> vector<2x256xf32>
    %16 = arith.addf %14, %15 : vector<2x256xf32>
    %c1 = arith.constant 1 : index
    %c0_13 = arith.constant 0 : index
    %c0_14 = arith.constant 0 : index
    %17 = vector.load %arg2[%c1, %c0_13, %c0_14] : memref<2x256x256xf32, #tpu.memory_space<vmem>>, vector<1x256x256xf32>
    %18 = vector.shape_cast %17 : vector<1x256x256xf32> to vector<256x256xf32>
    %c1_15 = arith.constant 1 : index
    %c0_16 = arith.constant 0 : index
    %c0_17 = arith.constant 0 : index
    %19 = vector.load %arg3[%c1_15, %c0_16, %c0_17] : memref<2x256x256xf32, #tpu.memory_space<vmem>>, vector<1x256x256xf32>
    %20 = vector.shape_cast %19 : vector<1x256x256xf32> to vector<256x256xf32>
    %21 = arith.truncf %4 : vector<2x256xf32> to vector<2x256xbf16>
    %22 = arith.extf %21 : vector<2x256xbf16> to vector<2x256xf32>
    %23 = arith.subf %4, %22 : vector<2x256xf32>
    %cst_18 = arith.constant dense<0.000000e+00> : vector<2x256xf32>
    %24 = tpu.matmul %22, %18, %cst_18 {dimension_numbers = #tpu.dot_dimension_numbers<[1], [0], [0], [1], [0, 0, 1, 1], [], []>} : vector<2x256xf32>, vector<256x256xf32>, vector<2x256xf32> -> vector<2x256xf32>
    %cst_19 = arith.constant dense<0.000000e+00> : vector<2x256xf32>
    %25 = tpu.matmul %23, %18, %cst_19 {dimension_numbers = #tpu.dot_dimension_numbers<[1], [0], [0], [1], [0, 0, 1, 1], [], []>} : vector<2x256xf32>, vector<256x256xf32>, vector<2x256xf32> -> vector<2x256xf32>
    %26 = arith.addf %24, %25 : vector<2x256xf32>
    %cst_20 = arith.constant dense<0.000000e+00> : vector<2x256xf32>
    %27 = tpu.matmul %22, %20, %cst_20 {dimension_numbers = #tpu.dot_dimension_numbers<[1], [0], [0], [1], [0, 0, 1, 1], [], []>} : vector<2x256xf32>, vector<256x256xf32>, vector<2x256xf32> -> vector<2x256xf32>
    %28 = arith.addf %26, %27 : vector<2x256xf32>
    %29 = arith.addf %16, %28 : vector<2x256xf32>
    %30 = arith.negf %29 : vector<2x256xf32>
    %31 = math.exp %30 : vector<2x256xf32>
    %cst_21 = arith.constant 1.000000e+00 : f32
    %32 = vector.broadcast %cst_21 : f32 to vector<2x256xf32>
    %33 = arith.addf %32, %31 : vector<2x256xf32>
    %34 = arith.divf %32, %33 : vector<2x256xf32>
    %35 = vector.shape_cast %34 : vector<2x256xf32> to vector<2x1x256xf32>
    %36 = vector.broadcast %35 : vector<2x1x256xf32> to vector<2x4x256xf32>
    %37 = arith.mulf %0, %36 : vector<2x4x256xf32>
    %c0_22 = arith.constant 0 : index
    %c0_23 = arith.constant 0 : index
    %c0_24 = arith.constant 0 : index
    %38 = vector.load %arg4[%c0_22, %c0_23, %c0_24] : memref<2x4x256xf32, #tpu.memory_space<vmem>>, vector<2x4x256xf32>
    tpu.vector_store %arg4[%c0_22, %c0_23, %c0_24], %37 {strides = array<i32>} : memref<2x4x256xf32, #tpu.memory_space<vmem>>, vector<2x4x256xf32>,
    return
  }
  func.func @transform_0(%arg0: i32) -> (i32, i32, i32) {
    %c0_i32 = arith.constant 0 : i32
    %c0_i32_0 = arith.constant 0 : i32
    %c0_i32_1 = arith.constant 0 : i32
    return %arg0, %c0_i32, %c0_i32_0 : i32, i32, i32
  }
  func.func @transform_1(%arg0: i32) -> (i32, i32, i32) {
    %c0_i32 = arith.constant 0 : i32
    %c0_i32_0 = arith.constant 0 : i32
    %c0_i32_1 = arith.constant 0 : i32
    %c0_i32_2 = arith.constant 0 : i32
    return %c0_i32, %c0_i32_0, %c0_i32_1 : i32, i32, i32
  }
  func.func @transform_2(%arg0: i32) -> (i32, i32, i32) {
    %c0_i32 = arith.constant 0 : i32
    %c0_i32_0 = arith.constant 0 : i32
    %c0_i32_1 = arith.constant 0 : i32
    %c0_i32_2 = arith.constant 0 : i32
    return %c0_i32, %c0_i32_0, %c0_i32_1 : i32, i32, i32
  }
  func.func @transform_3(%arg0: i32) -> (i32, i32, i32) {
    %c0_i32 = arith.constant 0 : i32
    %c0_i32_0 = arith.constant 0 : i32
    %c0_i32_1 = arith.constant 0 : i32
    return %arg0, %c0_i32, %c0_i32_0 : i32, i32, i32
  }
}

</mosaic_0001>

<bundles_post_ra>
// kernel: tpu_custom_call.1
= control target key start
LH: loop header
LB: loop body
LE: loop exit
PB: predicated region body
PF: predicated region fallthrough
CT: control target
= control target key end

     0   :  { %8 = vsyncpa [#allocation3], 0  ;;  %s1790_s0 = inlined_call_operand.hbm [shape: f32[2,4,256], index: 0, kind: input, shape index: {}]   ;;  %s1791_s1 = inlined_call_operand.hbm [shape: f32[2,256,256], index: 1, kind: input, shape index: {}]   ;;  %s1792_s2 = inlined_call_operand.hbm [shape: f32[2,256,256], index: 2, kind: input, shape index: {}]   ;;  %s1793_s3 = inlined_call_operand.hbm [shape: f32[2,4,256], index: 3, kind: output, shape index: {}]  }
   0x1   :  { %9 = vsyncpa [#allocation6], 0  ;;  %s28_s14 = sshll.u32 %s1791_s1, 4  ;;  %s29_s14 = int_to_ptr.hbm [resolvable:$true] %s28_s14 }
   0x2   :  { %10 = vsyncpa [#allocation4], 0  ;;  %s1155_s15 = smov [#allocation5]   ;;  %s15_s19 = sshll.u32 %s1790_s0, 4  ;;  %s16_s19 = int_to_ptr.hbm [resolvable:$true] %s15_s19 }
   0x3   :  { %s30_s16 = sshll.u32 %s1155_s15, 4  ;;  %s1156_s20 = smov 256   ;;  %s31_s16 = int_to_ptr.vmem [resolvable:$true] %s30_s16 }
   0x4   :  { %s1157_s21 = smov 16   ;;  %s1158_s22 = smov [#allocation2]  }
   0x5   :  { %36 = dma.hbm_to_vmem [thread:$0]  %s29_s14, 16384, %s31_s16, [#allocation6], %s1156_s20, %s1156_s20, %s1157_s21  }
   0x6   :  { %s17_s23 = sshll.u32 %s1158_s22, 4  ;;  %s1159_s24 = smov 128   ;;  %s18_s23 = int_to_ptr.vmem [resolvable:$true] %s17_s23 }
   0x7   :  { %s1160_s25 = smov 8   ;;  %s41_s27 = sshll.u32 %s1792_s2, 4  ;;  %s42_s27 = int_to_ptr.hbm [resolvable:$true] %s41_s27 }
   0x8   :  { %23 = dma.hbm_to_vmem [thread:$0]  %s16_s19, 256, %s18_s23, [#allocation3], %s1159_s24, %s1159_s24, %s1160_s25  }
   0x9   :  { %s1161_s28 = smov [#allocation7]  }
   0xa   :  { %s43_s0 = sshll.u32 %s1161_s28, 4  ;;  %s44_s0 = int_to_ptr.vmem [resolvable:$true] %s43_s0 }
   0xb   :  { %49 = dma.hbm_to_vmem [thread:$0]  %s42_s27, 16384, %s44_s0, [#allocation6], %s1156_s20, %s1156_s20, %s1157_s21  }
   0xc   :  { %1149 = dma.done.wait [#allocation3], 256  }
   0xd   :  { %1150 = vsyncadd [#allocation3], 4294967040 }
   0xe   :  { %1151 = dma.done.wait [#allocation6], 32768  }
   0xf   :  { %1152 = vsyncadd [#allocation6], 4294934528  ;;  %v1196_v0 = vld [vmem:[#allocation5 + $0xf0] sm:$0xff]  ;;  %v1200_v2 = vld [vmem:[#allocation5 + $0xf8] sm:$0xff]  ;;  %v1162_v36 = vmov 4.0   ;;  %vm77_vm0 = vcmask 1043456  }
  0x10   :  { %v1198_v1 = vld [vmem:[#allocation5 + $0x1f0] sm:$0xff]  ;;  %303 = vmatpush.msra.mxu0 %v1196_v0  ;;  %v1204_v3 = vld [vmem:[#allocation5 + $0x1f8] sm:$0xff]  ;;  %v1206_v4 = vld [vmem:[#allocation5 + $0xe0] sm:$0xff]  ;;  %343 = vmatpush.msra.mxu2 %v1200_v2  ;;  %1043 = vrcp.f32 %v1162_v36  ;;  %vm298_vm2 = vcmask 1041409   ;;  %vm994_vm10 = vcmask 1040384   ;;  %s1163_s2 = smov [#allocation8]  }
  0x11   :  { %323 = vmatpush.msra.mxu1 %v1198_v1  ;;  %v1208_v5 = vld [vmem:[#allocation5 + $0x1e0] sm:$0xff]  ;;  %363 = vmatpush.msra.mxu3 %v1204_v3  ;;  %v1212_v6 = vld [vmem:[#allocation5 + $0xe8] sm:$0xff]  ;;  %v1216_v8 = vld [vmem:[#allocation5 + $0xd0] sm:$0xff]  ;;  %s1016_s29 = sshll.u32 %s1163_s2, 4  ;;  %s1018_s5 = sshll.u32 %s1793_s3, 4  ;;  %s1017_s29 = int_to_ptr.vmem [resolvable:$true] %s1016_s29  ;;  %s1019_s5 = int_to_ptr.hbm [resolvable:$true] %s1018_s5 }
  0x12   :  { %v1214_v7 = vld [vmem:[#allocation5 + $0x1e8] sm:$0xff]  ;;  %304 = vmatpush.msra.mxu0 %v1206_v4  ;;  %v1220_v9 = vld [vmem:[#allocation5 + $0x1d0] sm:$0xff]  ;;  %v1222_v10 = vld [vmem:[#allocation5 + $0xd8] sm:$0xff]  ;;  %344 = vmatpush.msra.mxu2 %v1212_v6 }
  0x13   :  { %324 = vmatpush.msra.mxu1 %v1208_v5  ;;  %v1224_v11 = vld [vmem:[#allocation5 + $0x1d8] sm:$0xff]  ;;  %364 = vmatpush.msra.mxu3 %v1214_v7  ;;  %v1228_v12 = vld [vmem:[#allocation5 + $0xc0] sm:$0xff]  ;;  %v1234_v14 = vld [vmem:[#allocation5 + $0xc8] sm:$0xff] }
  0x14   :  { %v1230_v13 = vld [vmem:[#allocation5 + $0x1c0] sm:$0xff]  ;;  %305 = vmatpush.msra.mxu0 %v1216_v8  ;;  %v1236_v15 = vld [vmem:[#allocation5 + $0x1c8] sm:$0xff]  ;;  %345 = vmatpush.msra.mxu2 %v1222_v10  ;;  %v1240_v16 = vld [vmem:[#allocation5 + $0xb0] sm:$0xff] }
  0x15   :  { %325 = vmatpush.msra.mxu1 %v1220_v9  ;;  %365 = vmatpush.msra.mxu3 %v1224_v11  ;;  %v1242_v17 = vld [vmem:[#allocation5 + $0x1b0] sm:$0xff]  ;;  %v1246_v18 = vld [vmem:[#allocation5 + $0xb8] sm:$0xff]  ;;  %v1252_v20 = vld [vmem:[#allocation5 + $0xa0] sm:$0xff] }
  0x16   :  { %306 = vmatpush.msra.mxu0 %v1228_v12  ;;  %v1248_v19 = vld [vmem:[#allocation5 + $0x1b8] sm:$0xff]  ;;  %346 = vmatpush.msra.mxu2 %v1234_v14  ;;  %v1254_v21 = vld [vmem:[#allocation5 + $0x1a0] sm:$0xff]  ;;  %v1258_v22 = vld [vmem:[#allocation5 + $0xa8] sm:$0xff]  ;;  %v1330_v48 = vpop.eup %1043 }
  0x17   :  { %326 = vmatpush.msra.mxu1 %v1230_v13  ;;  %366 = vmatpush.msra.mxu3 %v1236_v15  ;;  %v1260_v23 = vld [vmem:[#allocation5 + $0x1a8] sm:$0xff]  ;;  %v1264_v24 = vld [vmem:[#allocation5 + $0x90] sm:$0xff]  ;;  %v1270_v26 = vld [vmem:[#allocation5 + $0x98] sm:$0xff]  ;;  %v107_v58 = vmul.f32 4.0, %v1330_v48  ;;  %vm111_vm1 = vweird.f32 %v1330_v48 }
  0x18   :  { %307 = vmatpush.msra.mxu0 %v1240_v16  ;;  %347 = vmatpush.msra.mxu2 %v1246_v18  ;;  %v1266_v25 = vld [vmem:[#allocation5 + $0x190] sm:$0xff]  ;;  %v1272_v27 = vld [vmem:[#allocation5 + $0x198] sm:$0xff]  ;;  %v1276_v28 = vld [vmem:[#allocation5 + $0x80] sm:$0xff] }
  0x19   :  { %327 = vmatpush.msra.mxu1 %v1242_v17  ;;  %367 = vmatpush.msra.mxu3 %v1248_v19  ;;  %v1278_v29 = vld [vmem:[#allocation5 + $0x180] sm:$0xff]  ;;  %v1282_v30 = vld [vmem:[#allocation5 + $0x88] sm:$0xff]  ;;  %v1288_v32 = vld [vmem:[#allocation5 + $0x70] sm:$0xff] }
  0x1a   :  { %308 = vmatpush.msra.mxu0 %v1252_v20  ;;  %348 = vmatpush.msra.mxu2 %v1258_v22  ;;  %v1284_v31 = vld [vmem:[#allocation5 + $0x188] sm:$0xff]  ;;  %v1290_v33 = vld [vmem:[#allocation5 + $0x170] sm:$0xff]  ;;  %v1294_v34 = vld [vmem:[#allocation5 + $0x78] sm:$0xff] }
  0x1b   :  { %328 = vmatpush.msra.mxu1 %v1254_v21  ;;  %368 = vmatpush.msra.mxu3 %v1260_v23  ;;  %v1296_v35 = vld [vmem:[#allocation5 + $0x178] sm:$0xff]  ;;  %v1300_v37 = vld [vmem:[#allocation5 + $0x60] sm:$0xff]  ;;  %v1306_v39 = vld [vmem:[#allocation5 + $0x68] sm:$0xff] }
  0x1c   :  { %309 = vmatpush.msra.mxu0 %v1264_v24  ;;  %349 = vmatpush.msra.mxu2 %v1270_v26  ;;  %v1302_v38 = vld [vmem:[#allocation5 + $0x160] sm:$0xff]  ;;  %v1308_v40 = vld [vmem:[#allocation5 + $0x168] sm:$0xff]  ;;  %v1312_v41 = vld [vmem:[#allocation5 + $0x50] sm:$0xff] }
  0x1d   :  { %329 = vmatpush.msra.mxu1 %v1266_v25  ;;  %369 = vmatpush.msra.mxu3 %v1272_v27  ;;  %v1314_v42 = vld [vmem:[#allocation5 + $0x150] sm:$0xff]  ;;  %v1318_v43 = vld [vmem:[#allocation5 + $0x58] sm:$0xff]  ;;  %v1324_v45 = vld [vmem:[#allocation5 + $0x40] sm:$0xff] }
  0x1e   :  { %310 = vmatpush.msra.mxu0 %v1276_v28  ;;  %350 = vmatpush.msra.mxu2 %v1282_v30  ;;  %v1320_v44 = vld [vmem:[#allocation5 + $0x158] sm:$0xff]  ;;  %v1326_v46 = vld [vmem:[#allocation5 + $0x140] sm:$0xff]  ;;  %v1328_v47 = vld [vmem:[#allocation5 + $0x48] sm:$0xff] }
  0x1f   :  { %330 = vmatpush.msra.mxu1 %v1278_v29  ;;  %370 = vmatpush.msra.mxu3 %v1284_v31  ;;  %1824 = vst [vmem:[#allocation12_spill] sm:$0xff] %v1326_v46  ;;  %v1334_v49 = vld [vmem:[#allocation5 + $0x148] sm:$0xff]  ;;  %v1336_v50 = vld [vmem:[#allocation2] sm:$0xff]  ;;  %v1338_v51 = vld [vmem:[#allocation2 + $0x8] sm:$0xff] }
  0x20   :  { %311 = vmatpush.msra.mxu0 %v1288_v32  ;;  %351 = vmatpush.msra.mxu2 %v1294_v34  ;;  %1825 = vst [vmem:[#allocation13_spill] sm:$0xff] %v1328_v47  ;;  %v1342_v52 = vld [vmem:[#allocation5 + $0x30] sm:$0xff]  ;;  %v1349_v54 = vld [vmem:[#allocation5 + $0x38] sm:$0xff]  ;;  %v1356_v56 = vld [vmem:[#allocation5 + $0x20] sm:$0xff] }
  0x21   :  { %331 = vmatpush.msra.mxu1 %v1290_v33  ;;  %371 = vmatpush.msra.mxu3 %v1296_v35  ;;  %1826 = vst [vmem:[#allocation14_spill] sm:$0xff] %v1334_v49  ;;  %v1344_v53 = vld [vmem:[#allocation5 + $0x130] sm:$0xff]  ;;  %v1351_v55 = vld [vmem:[#allocation5 + $0x138] sm:$0xff]  ;;  %v1358_v57 = vld [vmem:[#allocation5 + $0x120] sm:$0xff] }
  0x22   :  { %312 = vmatpush.msra.mxu0 %v1300_v37  ;;  %352 = vmatpush.msra.mxu2 %v1306_v39  ;;  %1827 = vst [vmem:[#allocation15_spill] sm:$0xff] %v1336_v50  ;;  %v1363_v59 = vld [vmem:[#allocation5 + $0x28] sm:$0xff]  ;;  %v1369_v61 = vld [vmem:[#allocation5 + $0x10] sm:$0xff]  ;;  %v1375_v63 = vld [vmem:[#allocation5 + $0x18] sm:$0xff] }
  0x23   :  { %332 = vmatpush.msra.mxu1 %v1302_v38  ;;  %372 = vmatpush.msra.mxu3 %v1308_v40  ;;  %1828 = vst [vmem:[#allocation16_spill] sm:$0xff] %v1338_v51  ;;  %v1365_v60 = vld [vmem:[#allocation5 + $0x128] sm:$0xff]  ;;  %v1371_v62 = vld [vmem:[#allocation5 + $0x110] sm:$0xff]  ;;  %v1377_v36 = vld [vmem:[#allocation5 + $0x118] sm:$0xff] }
  0x24   :  { %313 = vmatpush.msra.mxu0 %v1312_v41  ;;  %353 = vmatpush.msra.mxu2 %v1318_v43  ;;  %1829 = vst [vmem:[#allocation17_spill] sm:$0xff] %v1342_v52 }
  0x25   :  { %333 = vmatpush.msra.mxu1 %v1314_v42  ;;  %373 = vmatpush.msra.mxu3 %v1320_v44  ;;  %1830 = vst [vmem:[#allocation18_spill] sm:$0xff] %v1344_v53 }
  0x26   :  { %66 = vst [vmem:[#allocation1] ss:$2 sm:$0xff] %v1336_v50  ;;  %314 = vmatpush.msra.mxu0 %v1324_v45  ;;  %354 = vmatpush.msra.mxu2 %v1328_v47 }
  0x27   :  { %334 = vmatpush.msra.mxu1 %v1326_v46  ;;  %1831 = vst [vmem:[#allocation19_spill] sm:$0xff] %v1349_v54  ;;  %374 = vmatpush.msra.mxu3 %v1334_v49 }
  0x28   :  { %1832 = vst [vmem:[#allocation20_spill] sm:$0xff] %v1351_v55  ;;  %315 = vmatpush.msra.mxu0 %v1342_v52  ;;  %355 = vmatpush.msra.mxu2 %v1349_v54  ;;  %v1383_v54 = vld [vmem:[#allocation5 + $0x100] sm:$0xff]  ;;  %v1387_v52 = vld [vmem:[#allocation5 + $0x108] sm:$0xff] }
  0x29   :  { %70 = vst [vmem:[#allocation1 + $0x10] ss:$2 sm:$0xff] %v1338_v51  ;;  %335 = vmatpush.msra.mxu1 %v1344_v53  ;;  %375 = vmatpush.msra.mxu3 %v1351_v55  ;;  %v1379_v53 = vld [vmem:[#allocation5] sm:$0xff]  ;;  %v1385_v55 = vld [vmem:[#allocation5 + $0x8] sm:$0xff] }
  0x2a   :  { %1833 = vst [vmem:[#allocation21_spill] sm:$0xff] %v1356_v56  ;;  %316 = vmatpush.msra.mxu0 %v1356_v56  ;;  %356 = vmatpush.msra.mxu2 %v1363_v59  ;;  %v108_v56 = vsub.f32 1.0, %v107_v58 }
  0x2b   :  { %1834 = vst [vmem:[#allocation22_spill] sm:$0xff] %v1358_v57  ;;  %336 = vmatpush.msra.mxu1 %v1358_v57  ;;  %376 = vmatpush.msra.mxu3 %v1365_v60 }
  0x2c   :  { %1835 = vst [vmem:[#allocation23_spill] sm:$0xff] %v1363_v59  ;;  %317 = vmatpush.msra.mxu0 %v1369_v61  ;;  %357 = vmatpush.msra.mxu2 %v1375_v63 }
  0x2d   :  { %1836 = vst [vmem:[#allocation24_spill] sm:$0xff] %v1365_v60  ;;  %337 = vmatpush.msra.mxu1 %v1371_v62  ;;  %v67_v57 = vld.sshfl [vmem:[#allocation1] sm:$0xff pattern:$0x75316420]  ;;  %377 = vmatpush.msra.mxu3 %v1377_v36 }
  0x2e   :  { %1837 = vst [vmem:[#allocation25_spill] sm:$0xff] %v1369_v61  ;;  %v68_v49 = vld.sshfl [vmem:[#allocation1 + $0x8] sm:$0xff pattern:$0x75316420]  ;;  %318 = vmatpush.msra.mxu0 %v1379_v53  ;;  %v78_v47 = vsel %vm77_vm0, %v67_v57, 0.0  ;;  %358 = vmatpush.msra.mxu2 %v1385_v55 }
  0x2f   :  { %1838 = vst [vmem:[#allocation26_spill] sm:$0xff] %v1371_v62  ;;  %338 = vmatpush.msra.mxu1 %v1383_v54  ;;  %v85_v58 = vsel %vm77_vm0, %v68_v49, 0.0  ;;  %378 = vmatpush.msra.mxu3 %v1387_v52  ;;  %v109_v49 = vmul.f32 %v1330_v48, %v108_v56  ;;  %v251_v56 = vld [vmem:[#allocation7 + $0xf8] sm:$0xff] }
  0x30   :  { %1839 = vst [vmem:[#allocation27_spill] sm:$0xff] %v1375_v63  ;;  %v71_v59 = vld.sshfl [vmem:[#allocation1 + $0x10] sm:$0xff pattern:$0x75316420]  ;;  %v86_v63 = vrot.slane %v85_v58, 4  ;;  %391 = vmatpush.msrb.mxu0 %v1196_v0  ;;  %431 = vmatpush.msrb.mxu2 %v1200_v2 }
  0x31   :  { %1840 = vst [vmem:[#allocation28_spill] sm:$0xff] %v1377_v36  ;;  %v72_v60 = vld.sshfl [vmem:[#allocation1 + $0x18] sm:$0xff pattern:$0x75316420]  ;;  %v92_v61 = vsel %vm77_vm0, %v71_v59, 0.0  ;;  %v79_v36 = vrot.slane %v78_v47, 4  ;;  %411 = vmatpush.msrb.mxu1 %v1198_v1  ;;  %451 = vmatpush.msrb.mxu3 %v1204_v3  ;;  %v110_v3 = vadd.f32 %v1330_v48, %v109_v49 }
  0x32   :  { %1841 = vst [vmem:[#allocation29_spill] sm:$0xff] %v1379_v53  ;;  %v99_v62 = vsel %vm77_vm0, %v72_v60, 0.0  ;;  %v93_v46 = vrot.slane %v92_v61, 4  ;;  %v87_v59 = vadd.f32 %v86_v63, %v85_v58  ;;  %392 = vmatpush.msrb.mxu0 %v1206_v4  ;;  %432 = vmatpush.msrb.mxu2 %v1212_v6  ;;  %v248_v63 = vld [vmem:[#allocation7 + $0xe0] sm:$0xff]  ;;  %v249_v58 = vld [vmem:[#allocation7 + $0xe8] sm:$0xff]  ;;  %v246_v49 = vld [vmem:[#allocation7 + $0xd0] sm:$0xff] }
  0x33   :  { %117 = vst [vmem:[#allocation1] ss:$2 sm:$0xff] %v1336_v50  ;;  %v100_v53 = vrot.slane %v99_v62, 4  ;;  %v80_v57 = vadd.f32 %v79_v36, %v78_v47  ;;  %412 = vmatpush.msrb.mxu1 %v1208_v5  ;;  %452 = vmatpush.msrb.mxu3 %v1214_v7  ;;  %v280_v36 = vld [vmem:[#allocation7 + $0x1e0] sm:$0xff] }
  0x34   :  { %121 = vst [vmem:[#allocation1 + $0x10] ss:$2 sm:$0xff] %v1338_v51  ;;  %v94_v60 = vadd.f32 %v93_v46, %v92_v61  ;;  %v88_v1 = vrot.slane %v87_v59, 2  ;;  %393 = vmatpush.msrb.mxu0 %v1216_v8  ;;  %433 = vmatpush.msrb.mxu2 %v1222_v10  ;;  %v283_v61 = vld [vmem:[#allocation7 + $0x1f8] sm:$0xff] }
  0x35   :  { %v101_v50 = vadd.f32 %v100_v53, %v99_v62  ;;  %v81_v0 = vrot.slane %v80_v57, 2  ;;  %413 = vmatpush.msrb.mxu1 %v1220_v9  ;;  %453 = vmatpush.msrb.mxu3 %v1224_v11  ;;  %v112_v11 = vsel %vm111_vm1, %v1330_v48, %v110_v3  ;;  %v282_v53 = vld [vmem:[#allocation7 + $0x1f0] sm:$0xff] }
  0x36   :  { %v95_v51 = vrot.slane %v94_v60, 2  ;;  %v89_v5 = vadd.f32 %v88_v1, %v87_v59  ;;  %394 = vmatpush.msrb.mxu0 %v1228_v12  ;;  %434 = vmatpush.msrb.mxu2 %v1234_v14  ;;  %v279_v59 = vld [vmem:[#allocation7 + $0x1d8] sm:$0xff]  ;;  %v245_v1 = vld [vmem:[#allocation7 + $0xc8] sm:$0xff]  ;;  %v242_v3 = vld [vmem:[#allocation7 + $0xb0] sm:$0xff] }
  0x37   :  { %v102_v2 = vrot.slane %v101_v50, 2  ;;  %v82_v4 = vadd.f32 %v81_v0, %v80_v57  ;;  %414 = vmatpush.msrb.mxu1 %v1230_v13  ;;  %454 = vmatpush.msrb.mxu3 %v1236_v15  ;;  %v247_v57 = vld [vmem:[#allocation7 + $0xd8] sm:$0xff]  ;;  %v276_v0 = vld [vmem:[#allocation7 + $0x1c0] sm:$0xff] }
  0x38   :  { %v96_v46 = vadd.f32 %v95_v51, %v94_v60  ;;  %v90_v8 = vrot.slane %v89_v5, 1  ;;  %395 = vmatpush.msrb.mxu0 %v1240_v16  ;;  %435 = vmatpush.msrb.mxu2 %v1246_v18  ;;  %v1856_v48 = vld [vmem:[#allocation28_spill] sm:$0xff]  ;;  %v244_v60 = vld [vmem:[#allocation7 + $0xc0] sm:$0xff] }
  0x39   :  { %v103_v6 = vadd.f32 %v102_v2, %v101_v50  ;;  %v83_v7 = vrot.slane %v82_v4, 1  ;;  %415 = vmatpush.msrb.mxu1 %v1242_v17  ;;  %455 = vmatpush.msrb.mxu3 %v1248_v19  ;;  %v1857_v50 = vld [vmem:[#allocation29_spill] sm:$0xff]  ;;  %v250_v51 = vld [vmem:[#allocation7 + $0xf0] sm:$0xff]  ;;  %v277_v2 = vld [vmem:[#allocation7 + $0x1c8] sm:$0xff] }
  0x3a   :  { %v97_v9 = vrot.slane %v96_v46, 1  ;;  %v91_v13 = vadd.f32 %v90_v8, %v89_v5  ;;  %396 = vmatpush.msrb.mxu0 %v1252_v20  ;;  %436 = vmatpush.msrb.mxu2 %v1258_v22  ;;  %v243_v5 = vld [vmem:[#allocation7 + $0xb8] sm:$0xff]  ;;  %v241_v8 = vld [vmem:[#allocation7 + $0xa8] sm:$0xff] }
  0x3b   :  { %v104_v10 = vrot.slane %v103_v6, 1  ;;  %v84_v12 = vadd.f32 %v83_v7, %v82_v4  ;;  %416 = vmatpush.msrb.mxu1 %v1254_v21  ;;  %456 = vmatpush.msrb.mxu3 %v1260_v23  ;;  %v274_v4 = vld [vmem:[#allocation7 + $0x1b0] sm:$0xff]  ;;  %v240_v7 = vld [vmem:[#allocation7 + $0xa0] sm:$0xff] }
  0x3c   :  { %v98_v47 = vadd.f32 %v97_v9, %v96_v46  ;;  %v114_v16 = vmul.f32 %v112_v11, %v91_v13  ;;  %397 = vmatpush.msrb.mxu0 %v1264_v24  ;;  %437 = vmatpush.msrb.mxu2 %v1270_v26  ;;  %v275_v46 = vld [vmem:[#allocation7 + $0x1b8] sm:$0xff]  ;;  %v273_v9 = vld [vmem:[#allocation7 + $0x1a8] sm:$0xff] }
  0x3d   :  { %v105_v14 = vadd.f32 %v104_v10, %v103_v6  ;;  %v113_v15 = vmul.f32 %v112_v11, %v84_v12  ;;  %417 = vmatpush.msrb.mxu1 %v1266_v25  ;;  %457 = vmatpush.msrb.mxu3 %v1272_v27  ;;  %v1842_v27 = vld [vmem:[#allocation12_spill] sm:$0xff]  ;;  %v272_v6 = vld [vmem:[#allocation7 + $0x1a0] sm:$0xff]  ;;  %v239_v12 = vld [vmem:[#allocation7 + $0x98] sm:$0xff] }
  0x3e   :  { %v115_v17 = vmul.f32 %v112_v11, %v98_v47  ;;  %398 = vmatpush.msrb.mxu0 %v1276_v28  ;;  %438 = vmatpush.msrb.mxu2 %v1282_v30  ;;  %v1843_v30 = vld [vmem:[#allocation13_spill] sm:$0xff]  ;;  %v238_v10 = vld [vmem:[#allocation7 + $0x90] sm:$0xff]  ;;  %v236_v47 = vld [vmem:[#allocation7 + $0x80] sm:$0xff] }
  0x3f   :  { %v116_v18 = vmul.f32 %v112_v11, %v105_v14  ;;  %v1435_v19 = vpack.c.bf16 %v114_v16, %v113_v15  ;;  %418 = vmatpush.msrb.mxu1 %v1278_v29  ;;  %458 = vmatpush.msrb.mxu3 %v1284_v31  ;;  %v1844_v31 = vld [vmem:[#allocation14_spill] sm:$0xff]  ;;  %v270_v11 = vld [vmem:[#allocation7 + $0x190] sm:$0xff]  ;;  %v271_v13 = vld [vmem:[#allocation7 + $0x198] sm:$0xff] }
  0x40   :  { %399 = vmatpush.msrb.mxu0 %v1288_v32  ;;  %439 = vmatpush.msrb.mxu2 %v1294_v34  ;;  %v1846_v34 = vld [vmem:[#allocation18_spill] sm:$0xff] }
  0x41   :  { %v1439_v20 = vpack.c.bf16 %v116_v18, %v115_v17  ;;  %v286_v21 = vunpack.c.l.bf16 %v1435_v19  ;;  %419 = vmatpush.msrb.mxu1 %v1290_v33  ;;  %459 = vmatpush.msrb.mxu3 %v1296_v35  ;;  %v287_v23 = vunpack.c.h.bf16 %v1435_v19  ;;  %v1845_v33 = vld [vmem:[#allocation17_spill] sm:$0xff]  ;;  %v1847_v35 = vld [vmem:[#allocation19_spill] sm:$0xff]  ;;  %v268_v14 = vld [vmem:[#allocation7 + $0x180] sm:$0xff] }
  0x42   :  { %400 = vmatpush.msrb.mxu0 %v1300_v37  ;;  %440 = vmatpush.msrb.mxu2 %v1306_v39  ;;  %v1848_v37 = vld [vmem:[#allocation20_spill] sm:$0xff]  ;;  %v235_v19 = vld [vmem:[#allocation7 + $0x78] sm:$0xff] }
  0x43   :  { %v288_v22 = vunpack.c.l.bf16 %v1439_v20  ;;  %420 = vmatpush.msrb.mxu1 %v1302_v38  ;;  %v289_v24 = vunpack.c.h.bf16 %v1439_v20  ;;  %460 = vmatpush.msrb.mxu3 %v1308_v40  ;;  %v290_v25 = vsub.f32 %v113_v15, %v286_v21  ;;  %v291_v28 = vsub.f32 %v114_v16, %v287_v23  ;;  %v1849_v38 = vld [vmem:[#allocation21_spill] sm:$0xff]  ;;  %v1850_v40 = vld [vmem:[#allocation22_spill] sm:$0xff]  ;;  %v237_v15 = vld [vmem:[#allocation7 + $0x88] sm:$0xff] }
  0x44   :  { %401 = vmatpush.msrb.mxu0 %v1312_v41  ;;  %441 = vmatpush.msrb.mxu2 %v1318_v43  ;;  %v1851_v41 = vld [vmem:[#allocation23_spill] sm:$0xff]  ;;  %v1853_v43 = vld [vmem:[#allocation25_spill] sm:$0xff] }
  0x45   :  { %v292_v26 = vsub.f32 %v115_v17, %v288_v22  ;;  %421 = vmatpush.msrb.mxu1 %v1314_v42  ;;  %461 = vmatpush.msrb.mxu3 %v1320_v44  ;;  %v293_v29 = vsub.f32 %v116_v18, %v289_v24  ;;  %v1852_v42 = vld [vmem:[#allocation24_spill] sm:$0xff]  ;;  %v1854_v44 = vld [vmem:[#allocation26_spill] sm:$0xff]  ;;  %v1482_v62 = vsel %vm298_vm2, %v288_v22, %v286_v21  ;;  %v269_v16 = vld [vmem:[#allocation7 + $0x188] sm:$0xff] }
  0x46   :  { %402 = vmatpush.msrb.mxu0 %v1324_v45  ;;  %442 = vmatpush.msrb.mxu2 %v1843_v30  ;;  %v1855_v45 = vld [vmem:[#allocation27_spill] sm:$0xff]  ;;  %v234_v17 = vld [vmem:[#allocation7 + $0x70] sm:$0xff]  ;;  %v267_v20 = vld [vmem:[#allocation7 + $0x178] sm:$0xff] }
  0x47   :  { %422 = vmatpush.msrb.mxu1 %v1842_v27  ;;  %462 = vmatpush.msrb.mxu3 %v1844_v31  ;;  %v299_v32 = vsel %vm298_vm2, %v292_v26, %v290_v25  ;;  %v300_v39 = vsel %vm298_vm2, %v293_v29, %v291_v28  ;;  %v266_v18 = vld [vmem:[#allocation7 + $0x170] sm:$0xff]  ;;  %v232_v21 = vld [vmem:[#allocation7 + $0x60] sm:$0xff]  ;;  %v231_v27 = vld [vmem:[#allocation7 + $0x58] sm:$0xff] }
  0x48   :  { %403 = vmatpush.msrb.mxu0 %v1845_v33  ;;  %443 = vmatpush.msrb.mxu2 %v1847_v35  ;;  %v264_v22 = vld [vmem:[#allocation7 + $0x160] sm:$0xff]  ;;  %v230_v25 = vld [vmem:[#allocation7 + $0x50] sm:$0xff]  ;;  %v263_v28 = vld [vmem:[#allocation7 + $0x158] sm:$0xff] }
  0x49   :  { %423 = vmatpush.msrb.mxu1 %v1846_v34  ;;  %463 = vmatpush.msrb.mxu3 %v1848_v37  ;;  %v262_v26 = vld [vmem:[#allocation7 + $0x150] sm:$0xff]  ;;  %v228_v29 = vld [vmem:[#allocation7 + $0x40] sm:$0xff]  ;;  %v229_v31 = vld [vmem:[#allocation7 + $0x48] sm:$0xff] }
  0x4a   :  { %359 = vmatmul.f32.vlgmr.msra.gmra.mxu2 %v299_v32  ;;  %404 = vmatpush.msrb.mxu0 %v1849_v38  ;;  %v260_v30 = vld [vmem:[#allocation7 + $0x140] sm:$0xff]  ;;  %v226_v33 = vld [vmem:[#allocation7 + $0x30] sm:$0xff]  ;;  %v227_v35 = vld [vmem:[#allocation7 + $0x38] sm:$0xff] }
  0x4b   :  { %424 = vmatpush.msrb.mxu1 %v1850_v40  ;;  %444 = vmatpush.msrb.mxu2 %v1851_v41  ;;  %v258_v34 = vld [vmem:[#allocation7 + $0x130] sm:$0xff]  ;;  %v259_v37 = vld [vmem:[#allocation7 + $0x138] sm:$0xff]  ;;  %v224_v38 = vld [vmem:[#allocation7 + $0x20] sm:$0xff] }
  0x4c   :  { %464 = vmatpush.msrb.mxu3 %v1852_v42  ;;  %405 = vmatpush.msrb.mxu0 %v1853_v43  ;;  %v225_v40 = vld [vmem:[#allocation7 + $0x28] sm:$0xff]  ;;  %v222_v42 = vld [vmem:[#allocation7 + $0x10] sm:$0xff] }
  0x4d   :  { %379 = vmatmul.f32.vlgmr.msra.gmra.mxu3 %v300_v39  ;;  %425 = vmatpush.msrb.mxu1 %v1854_v44  ;;  %v257_v41 = vld [vmem:[#allocation7 + $0x128] sm:$0xff]  ;;  %v254_v43 = vld [vmem:[#allocation7 + $0x110] sm:$0xff]  ;;  %v223_v44 = vld [vmem:[#allocation7 + $0x18] sm:$0xff] }
  0x4e   :  { %445 = vmatpush.msrb.mxu2 %v1855_v45  ;;  %465 = vmatpush.msrb.mxu3 %v1856_v48  ;;  %v255_v45 = vld [vmem:[#allocation7 + $0x118] sm:$0xff]  ;;  %v220_v48 = vld [vmem:[#allocation7] sm:$0xff] }
  0x4f   :  { %406 = vmatpush.msrb.mxu0 %v1857_v50  ;;  %426 = vmatpush.msrb.mxu1 %v1383_v54  ;;  %v281_v54 = vld [vmem:[#allocation7 + $0x1e8] sm:$0xff]  ;;  %v252_v50 = vld [vmem:[#allocation7 + $0x100] sm:$0xff] }
  0x50   :  { %446 = vmatpush.msrb.mxu2 %v1385_v55  ;;  %466 = vmatpush.msrb.mxu3 %v1387_v52  ;;  %v1486_v52 = vsel %vm298_vm2, %v289_v24, %v287_v23  ;;  %v278_v55 = vld [vmem:[#allocation7 + $0x1d0] sm:$0xff]  ;;  %v233_v23 = vld [vmem:[#allocation7 + $0x68] sm:$0xff] }
  0x51   :  { %319 = vmatmul.f32.vlgmr.msra.gmra.mxu0 %v299_v32  ;;  %339 = vmatmul.f32.vlgmr.msra.gmra.mxu1 %v300_v39  ;;  %v265_v24 = vld [vmem:[#allocation7 + $0x168] sm:$0xff]  ;;  %v256_v39 = vld [vmem:[#allocation7 + $0x120] sm:$0xff] }
  0x52   :  { %471 = vmatpush.msra.mxu0 %v250_v51  ;;  %491 = vmatpush.msra.mxu1 %v282_v53  ;;  %v261_v32 = vld [vmem:[#allocation7 + $0x148] sm:$0xff] }
  0x53   :  { %511 = vmatpush.msra.mxu2 %v251_v56  ;;  %531 = vmatpush.msra.mxu3 %v283_v61  ;;  %v221_v51 = vld [vmem:[#allocation7 + $0x8] sm:$0xff]  ;;  %v1491_v56 = vld [vmem:[#allocation5 + $0x2f0] sm:$0xff] }
  0x54   :  { %447 = vmatmul.f32.vlgmr.msrb.gmra.mxu2 %v1482_v62  ;;  %472 = vmatpush.msra.mxu0 %v248_v63  ;;  %v253_v53 = vld [vmem:[#allocation7 + $0x108] sm:$0xff]  ;;  %v1493_v61 = vld [vmem:[#allocation5 + $0x3f0] sm:$0xff]  ;;  %v1497_v63 = vld [vmem:[#allocation5 + $0x2f8] sm:$0xff] }
  0x55   :  { %492 = vmatpush.msra.mxu1 %v280_v36  ;;  %512 = vmatpush.msra.mxu2 %v249_v58  ;;  %v1499_v36 = vld [vmem:[#allocation5 + $0x3f8] sm:$0xff]  ;;  %v1503_v58 = vld [vmem:[#allocation5 + $0x2e0] sm:$0xff] }
  0x56   :  { %532 = vmatpush.msra.mxu3 %v281_v54  ;;  %473 = vmatpush.msra.mxu0 %v246_v49  ;;  %v1505_v54 = vld [vmem:[#allocation5 + $0x3e0] sm:$0xff]  ;;  %v1509_v49 = vld [vmem:[#allocation5 + $0x2e8] sm:$0xff] }
  0x57   :  { %467 = vmatmul.f32.vlgmr.msrb.gmra.mxu3 %v1486_v52  ;;  %493 = vmatpush.msra.mxu1 %v278_v55  ;;  %v1511_v55 = vld [vmem:[#allocation5 + $0x3e8] sm:$0xff] }
  0x58   :  { %513 = vmatpush.msra.mxu2 %v247_v57  ;;  %533 = vmatpush.msra.mxu3 %v279_v59  ;;  %v1515_v57 = vld [vmem:[#allocation5 + $0x2d0] sm:$0xff]  ;;  %v1523_v59 = vld [vmem:[#allocation5 + $0x3d8] sm:$0xff] }
  0x59   :  { %474 = vmatpush.msra.mxu0 %v244_v60  ;;  %494 = vmatpush.msra.mxu1 %v276_v0  ;;  %v1527_v60 = vld [vmem:[#allocation5 + $0x2c0] sm:$0xff] }
  0x5a   :  { %514 = vmatpush.msra.mxu2 %v245_v1  ;;  %534 = vmatpush.msra.mxu3 %v277_v2  ;;  %v1529_v0 = vld [vmem:[#allocation5 + $0x3c0] sm:$0xff]  ;;  %v1533_v1 = vld [vmem:[#allocation5 + $0x2c8] sm:$0xff] }
  0x5b   :  { %475 = vmatpush.msra.mxu0 %v242_v3  ;;  %495 = vmatpush.msra.mxu1 %v274_v4  ;;  %v1535_v2 = vld [vmem:[#allocation5 + $0x3c8] sm:$0xff]  ;;  %v1539_v3 = vld [vmem:[#allocation5 + $0x2b0] sm:$0xff] }
  0x5c   :  { %515 = vmatpush.msra.mxu2 %v243_v5  ;;  %535 = vmatpush.msra.mxu3 %v275_v46  ;;  %v1541_v4 = vld [vmem:[#allocation5 + $0x3b0] sm:$0xff]  ;;  %v1545_v5 = vld [vmem:[#allocation5 + $0x2b8] sm:$0xff] }
  0x5d   :  { %407 = vmatmul.f32.vlgmr.msrb.gmra.mxu0 %v1482_v62  ;;  %496 = vmatpush.msra.mxu1 %v272_v6  ;;  %v1547_v46 = vld [vmem:[#allocation5 + $0x3b8] sm:$0xff]  ;;  %v1551_v6 = vld [vmem:[#allocation5 + $0x2a0] sm:$0xff] }
  0x5e   :  { %476 = vmatpush.msra.mxu0 %v240_v7  ;;  %516 = vmatpush.msra.mxu2 %v241_v8  ;;  %v1553_v7 = vld [vmem:[#allocation5 + $0x3a0] sm:$0xff]  ;;  %v1557_v8 = vld [vmem:[#allocation5 + $0x2a8] sm:$0xff] }
  0x5f   :  { %536 = vmatpush.msra.mxu3 %v273_v9  ;;  %427 = vmatmul.f32.vlgmr.msrb.gmra.mxu1 %v1486_v52  ;;  %v1559_v9 = vld [vmem:[#allocation5 + $0x3a8] sm:$0xff] }
  0x60   :  { %477 = vmatpush.msra.mxu0 %v238_v10  ;;  %497 = vmatpush.msra.mxu1 %v270_v11  ;;  %v1561_v10 = vld [vmem:[#allocation5 + $0x290] sm:$0xff] }
  0x61   :  { %517 = vmatpush.msra.mxu2 %v239_v12  ;;  %537 = vmatpush.msra.mxu3 %v271_v13  ;;  %v1565_v11 = vld [vmem:[#allocation5 + $0x390] sm:$0xff]  ;;  %v1567_v12 = vld [vmem:[#allocation5 + $0x298] sm:$0xff] }
  0x62   :  { %478 = vmatpush.msra.mxu0 %v236_v47  ;;  %498 = vmatpush.msra.mxu1 %v268_v14  ;;  %v1569_v13 = vld [vmem:[#allocation5 + $0x398] sm:$0xff]  ;;  %v1573_v47 = vld [vmem:[#allocation5 + $0x280] sm:$0xff] }
  0x63   :  { %518 = vmatpush.msra.mxu2 %v237_v15  ;;  %538 = vmatpush.msra.mxu3 %v269_v16  ;;  %v1575_v14 = vld [vmem:[#allocation5 + $0x380] sm:$0xff]  ;;  %v1577_v15 = vld [vmem:[#allocation5 + $0x288] sm:$0xff] }
  0x64   :  { %479 = vmatpush.msra.mxu0 %v234_v17  ;;  %499 = vmatpush.msra.mxu1 %v266_v18  ;;  %v1581_v16 = vld [vmem:[#allocation5 + $0x388] sm:$0xff]  ;;  %v1583_v17 = vld [vmem:[#allocation5 + $0x270] sm:$0xff] }
  0x65   :  { %519 = vmatpush.msra.mxu2 %v235_v19  ;;  %539 = vmatpush.msra.mxu3 %v267_v20  ;;  %v1585_v18 = vld [vmem:[#allocation5 + $0x370] sm:$0xff]  ;;  %v118_v19 = vld.sshfl [vmem:[#allocation1] sm:$0xff pattern:$0x75316420] }
  0x66   :  { %480 = vmatpush.msra.mxu0 %v232_v21  ;;  %500 = vmatpush.msra.mxu1 %v264_v22  ;;  %v119_v20 = vld.sshfl [vmem:[#allocation1 + $0x8] sm:$0xff pattern:$0x75316420]  ;;  %v122_v21 = vld.sshfl [vmem:[#allocation1 + $0x10] sm:$0xff pattern:$0x75316420] }
  0x67   :  { %520 = vmatpush.msra.mxu2 %v233_v23  ;;  %540 = vmatpush.msra.mxu3 %v265_v24  ;;  %v123_v22 = vld.sshfl [vmem:[#allocation1 + $0x18] sm:$0xff pattern:$0x75316420]  ;;  %v1593_v23 = vld [vmem:[#allocation5 + $0x278] sm:$0xff] }
  0x68   :  { %481 = vmatpush.msra.mxu0 %v230_v25  ;;  %501 = vmatpush.msra.mxu1 %v262_v26  ;;  %v1595_v24 = vld [vmem:[#allocation5 + $0x378] sm:$0xff]  ;;  %v1599_v25 = vld [vmem:[#allocation5 + $0x260] sm:$0xff] }
  0x69   :  { %521 = vmatpush.msra.mxu2 %v231_v27  ;;  %541 = vmatpush.msra.mxu3 %v263_v28  ;;  %v1601_v26 = vld [vmem:[#allocation5 + $0x360] sm:$0xff]  ;;  %v128_v27 = vsel %vm77_vm0, %v118_v19, -inf  ;;  %v1606_v28 = vld [vmem:[#allocation5 + $0x268] sm:$0xff] }
  0x6a   :  { %482 = vmatpush.msra.mxu0 %v228_v29  ;;  %502 = vmatpush.msra.mxu1 %v260_v30  ;;  %v1608_v29 = vld [vmem:[#allocation5 + $0x368] sm:$0xff]  ;;  %v135_v30 = vsel %vm77_vm0, %v119_v20, -inf  ;;  %v1651_v20 = vld [vmem:[#allocation5 + $0x220] sm:$0xff] }
  0x6b   :  { %522 = vmatpush.msra.mxu2 %v229_v31  ;;  %542 = vmatpush.msra.mxu3 %v261_v32  ;;  %v142_v31 = vsel %vm77_vm0, %v122_v21, -inf  ;;  %v149_v32 = vsel %vm77_vm0, %v123_v22, -inf  ;;  %1864 = vst [vmem:[#allocation20_spill] sm:$0xff] %v1651_v20  ;;  %v1653_v21 = vld [vmem:[#allocation5 + $0x320] sm:$0xff] }
  0x6c   :  { %483 = vmatpush.msra.mxu0 %v226_v33  ;;  %503 = vmatpush.msra.mxu1 %v258_v34  ;;  %v1615_v33 = vld [vmem:[#allocation5 + $0x250] sm:$0xff]  ;;  %1865 = vst [vmem:[#allocation21_spill] sm:$0xff] %v1653_v21 }
  0x6d   :  { %523 = vmatpush.msra.mxu2 %v227_v35  ;;  %543 = vmatpush.msra.mxu3 %v259_v37  ;;  %v1617_v34 = vld [vmem:[#allocation5 + $0x350] sm:$0xff]  ;;  %v1621_v35 = vld [vmem:[#allocation5 + $0x258] sm:$0xff] }
  0x6e   :  { %484 = vmatpush.msra.mxu0 %v224_v38  ;;  %504 = vmatpush.msra.mxu1 %v256_v39  ;;  %1858 = vst [vmem:[#allocation12_spill] sm:$0xff] %v1621_v35  ;;  %v1623_v37 = vld [vmem:[#allocation5 + $0x358] sm:$0xff]  ;;  %v129_v38 = vrot.slane %v128_v27, 4  ;;  %v1627_v39 = vld [vmem:[#allocation5 + $0x240] sm:$0xff] }
  0x6f   :  { %524 = vmatpush.msra.mxu2 %v225_v40  ;;  %544 = vmatpush.msra.mxu3 %v257_v41  ;;  %1859 = vst [vmem:[#allocation13_spill] sm:$0xff] %v1623_v37  ;;  %v1629_v40 = vld [vmem:[#allocation5 + $0x340] sm:$0xff]  ;;  %v136_v41 = vrot.slane %v135_v30, 4 }
  0x70   :  { %485 = vmatpush.msra.mxu0 %v222_v42  ;;  %505 = vmatpush.msra.mxu1 %v254_v43  ;;  %1860 = vst [vmem:[#allocation14_spill] sm:$0xff] %v1627_v39  ;;  %v143_v42 = vrot.slane %v142_v31, 4  ;;  %v150_v43 = vrot.slane %v149_v32, 4  ;;  %v130_v19 = vmax.f32 %v128_v27, %v129_v38  ;;  %v1663_v27 = vld [vmem:[#allocation5 + $0x210] sm:$0xff] }
  0x71   :  { %525 = vmatpush.msra.mxu2 %v223_v44  ;;  %545 = vmatpush.msra.mxu3 %v255_v45  ;;  %1861 = vst [vmem:[#allocation17_spill] sm:$0xff] %v1629_v40  ;;  %v1633_v44 = vld [vmem:[#allocation5 + $0x248] sm:$0xff]  ;;  %v137_v22 = vmax.f32 %v135_v30, %v136_v41  ;;  %v1665_v38 = vld [vmem:[#allocation5 + $0x310] sm:$0xff]  ;;  %v1669_v30 = vld [vmem:[#allocation5 + $0x218] sm:$0xff] }
  0x72   :  { %486 = vmatpush.msra.mxu0 %v220_v48  ;;  %506 = vmatpush.msra.mxu1 %v252_v50  ;;  %v1635_v45 = vld [vmem:[#allocation5 + $0x348] sm:$0xff]  ;;  %v1639_v48 = vld [vmem:[#allocation5 + $0x230] sm:$0xff]  ;;  %1868 = vst [vmem:[#allocation24_spill] sm:$0xff] %v1663_v27  ;;  %v1675_v41 = vld [vmem:[#allocation5 + $0x200] sm:$0xff] }
  0x73   :  { %526 = vmatpush.msra.mxu2 %v221_v51  ;;  %546 = vmatpush.msra.mxu3 %v253_v53  ;;  %v1641_v50 = vld [vmem:[#allocation5 + $0x330] sm:$0xff]  ;;  %v1645_v51 = vld [vmem:[#allocation5 + $0x238] sm:$0xff]  ;;  %1869 = vst [vmem:[#allocation25_spill] sm:$0xff] %v1665_v38 }
  0x74   :  { %487 = vmatmul.f32.vlgmr.msra.gmra.mxu0 %v1482_v62  ;;  %507 = vmatmul.f32.vlgmr.msra.gmra.mxu1 %v1486_v52  ;;  %1862 = vst [vmem:[#allocation18_spill] sm:$0xff] %v1645_v51  ;;  %v1647_v53 = vld [vmem:[#allocation5 + $0x338] sm:$0xff] }
  0x75   :  { %527 = vmatmul.f32.vlgmr.msra.gmra.mxu2 %v1482_v62  ;;  %547 = vmatmul.f32.vlgmr.msra.gmra.mxu3 %v1486_v52  ;;  %v1517_v62 = vld [vmem:[#allocation5 + $0x3d0] sm:$0xff]  ;;  %v1521_v52 = vld [vmem:[#allocation5 + $0x2d8] sm:$0xff]  ;;  %1863 = vst [vmem:[#allocation19_spill] sm:$0xff] %v1647_v53 }
  0x76   :  { %701 = vmatpush.msrb.mxu0 %v1491_v56  ;;  %721 = vmatpush.msrb.mxu1 %v1493_v61 }
  0x77   :  { %741 = vmatpush.msrb.mxu2 %v1497_v63  ;;  %761 = vmatpush.msrb.mxu3 %v1499_v36 }
  0x78   :  { %702 = vmatpush.msrb.mxu0 %v1503_v58  ;;  %722 = vmatpush.msrb.mxu1 %v1505_v54 }
  0x79   :  { %742 = vmatpush.msrb.mxu2 %v1509_v49  ;;  %762 = vmatpush.msrb.mxu3 %v1511_v55 }
  0x7a   :  { %703 = vmatpush.msrb.mxu0 %v1515_v57  ;;  %723 = vmatpush.msrb.mxu1 %v1517_v62 }
  0x7b   :  { %743 = vmatpush.msrb.mxu2 %v1521_v52  ;;  %763 = vmatpush.msrb.mxu3 %v1523_v59 }
  0x7c   :  { %704 = vmatpush.msrb.mxu0 %v1527_v60  ;;  %724 = vmatpush.msrb.mxu1 %v1529_v0 }
  0x7d   :  { %744 = vmatpush.msrb.mxu2 %v1533_v1  ;;  %764 = vmatpush.msrb.mxu3 %v1535_v2 }
  0x7e   :  { %705 = vmatpush.msrb.mxu0 %v1539_v3  ;;  %725 = vmatpush.msrb.mxu1 %v1541_v4 }
  0x7f   :  { %745 = vmatpush.msrb.mxu2 %v1545_v5  ;;  %765 = vmatpush.msrb.mxu3 %v1547_v46 }
  0x80   :  { %706 = vmatpush.msrb.mxu0 %v1551_v6  ;;  %726 = vmatpush.msrb.mxu1 %v1553_v7 }
  0x81   :  { %746 = vmatpush.msrb.mxu2 %v1557_v8  ;;  %766 = vmatpush.msrb.mxu3 %v1559_v9 }
  0x82   :  { %707 = vmatpush.msrb.mxu0 %v1561_v10  ;;  %727 = vmatpush.msrb.mxu1 %v1565_v11 }
  0x83   :  { %747 = vmatpush.msrb.mxu2 %v1567_v12  ;;  %767 = vmatpush.msrb.mxu3 %v1569_v13 }
  0x84   :  { %708 = vmatpush.msrb.mxu0 %v1573_v47  ;;  %728 = vmatpush.msrb.mxu1 %v1575_v14 }
  0x85   :  { %748 = vmatpush.msrb.mxu2 %v1577_v15  ;;  %768 = vmatpush.msrb.mxu3 %v1581_v16 }
  0x86   :  { %709 = vmatpush.msrb.mxu0 %v1583_v17  ;;  %729 = vmatpush.msrb.mxu1 %v1585_v18 }
  0x87   :  { %749 = vmatpush.msrb.mxu2 %v1593_v23  ;;  %769 = vmatpush.msrb.mxu3 %v1595_v24 }
  0x88   :  { %710 = vmatpush.msrb.mxu0 %v1599_v25  ;;  %730 = vmatpush.msrb.mxu1 %v1601_v26 }
  0x89   :  { %750 = vmatpush.msrb.mxu2 %v1606_v28  ;;  %770 = vmatpush.msrb.mxu3 %v1608_v29 }
  0x8a   :  { %711 = vmatpush.msrb.mxu0 %v1615_v33  ;;  %731 = vmatpush.msrb.mxu1 %v1617_v34 }
  0x8b   :  { %751 = vmatpush.msrb.mxu2 %v1621_v35  ;;  %771 = vmatpush.msrb.mxu3 %v1623_v37  ;;  %v144_v37 = vmax.f32 %v142_v31, %v143_v42  ;;  %v151_v35 = vmax.f32 %v149_v32, %v150_v43  ;;  %v1671_v31 = vld [vmem:[#allocation5 + $0x318] sm:$0xff]  ;;  %v131_v32 = vrot.slane %v130_v19, 2  ;;  %v1677_v42 = vld [vmem:[#allocation5 + $0x300] sm:$0xff]  ;;  %v138_v43 = vrot.slane %v137_v22, 2 }
  0x8c   :  { %712 = vmatpush.msrb.mxu0 %v1627_v39  ;;  %732 = vmatpush.msrb.mxu1 %v1629_v40  ;;  %v1657_v40 = vld [vmem:[#allocation5 + $0x228] sm:$0xff] }
  0x8d   :  { %752 = vmatpush.msrb.mxu2 %v1633_v44  ;;  %772 = vmatpush.msrb.mxu3 %v1635_v45  ;;  %1866 = vst [vmem:[#allocation22_spill] sm:$0xff] %v1657_v40  ;;  %v1659_v39 = vld [vmem:[#allocation5 + $0x328] sm:$0xff] }
  0x8e   :  { %713 = vmatpush.msrb.mxu0 %v1639_v48  ;;  %733 = vmatpush.msrb.mxu1 %v1641_v50  ;;  %1867 = vst [vmem:[#allocation23_spill] sm:$0xff] %v1659_v39 }
  0x8f   :  { %753 = vmatpush.msrb.mxu2 %v1645_v51  ;;  %773 = vmatpush.msrb.mxu3 %v1647_v53  ;;  %v145_v53 = vrot.slane %v144_v37, 2  ;;  %v152_v51 = vrot.slane %v151_v35, 2 }
  0x90   :  { %714 = vmatpush.msrb.mxu0 %v1651_v20  ;;  %734 = vmatpush.msrb.mxu1 %v1653_v21  ;;  %v1681_v21 = vld [vmem:[#allocation5 + $0x208] sm:$0xff] }
  0x91   :  { %754 = vmatpush.msrb.mxu2 %v1657_v40  ;;  %774 = vmatpush.msrb.mxu3 %v1659_v39  ;;  %v1683_v20 = vld [vmem:[#allocation5 + $0x308] sm:$0xff]  ;;  %v132_v39 = vmax.f32 %v130_v19, %v131_v32  ;;  %v146_v40 = vmax.f32 %v144_v37, %v145_v53  ;;  %v674_v53 = vld [vmem:[#allocation7 + $0x3b8] sm:$0xff] }
  0x92   :  { %715 = vmatpush.msrb.mxu0 %v1663_v27  ;;  %735 = vmatpush.msrb.mxu1 %v1665_v38  ;;  %v139_v27 = vmax.f32 %v137_v22, %v138_v43  ;;  %v153_v38 = vmax.f32 %v151_v35, %v152_v51  ;;  %v642_v51 = vld [vmem:[#allocation7 + $0x2b8] sm:$0xff]  ;;  %v667_v43 = vld [vmem:[#allocation7 + $0x380] sm:$0xff] }
  0x93   :  { %755 = vmatpush.msrb.mxu2 %v1669_v30  ;;  %775 = vmatpush.msrb.mxu3 %v1671_v31  ;;  %v133_v19 = vrot.slane %v132_v39, 1  ;;  %v147_v37 = vrot.slane %v146_v40, 1  ;;  %v638_v32 = vld [vmem:[#allocation7 + $0x298] sm:$0xff] }
  0x94   :  { %716 = vmatpush.msrb.mxu0 %v1675_v41  ;;  %736 = vmatpush.msrb.mxu1 %v1677_v42  ;;  %v140_v22 = vrot.slane %v139_v27, 1  ;;  %v154_v35 = vrot.slane %v153_v38, 1 }
  0x95   :  { %756 = vmatpush.msrb.mxu2 %v1681_v21  ;;  %776 = vmatpush.msrb.mxu3 %v1683_v20 }
  0x96   :  { %789 = vmatpush.msra.mxu0 %v1491_v56  ;;  %809 = vmatpush.msra.mxu1 %v1493_v61  ;;  %v134_v56 = vmax.f32 %v132_v39, %v133_v19  ;;  %v141_v61 = vmax.f32 %v139_v27, %v140_v22  ;;  %v643_v39 = vld [vmem:[#allocation7 + $0x2c0] sm:$0xff]  ;;  %v640_v27 = vld [vmem:[#allocation7 + $0x2a8] sm:$0xff] }
  0x97   :  { %829 = vmatpush.msra.mxu2 %v1497_v63  ;;  %849 = vmatpush.msra.mxu3 %v1499_v36  ;;  %v148_v63 = vmax.f32 %v146_v40, %v147_v37  ;;  %v155_v36 = vmax.f32 %v153_v38, %v154_v35  ;;  %v675_v40 = vld [vmem:[#allocation7 + $0x3c0] sm:$0xff]  ;;  %v672_v38 = vld [vmem:[#allocation7 + $0x3a8] sm:$0xff]  ;;  %v633_v37 = vld [vmem:[#allocation7 + $0x270] sm:$0xff] }
  0x98   :  { %790 = vmatpush.msra.mxu0 %v1503_v58  ;;  %810 = vmatpush.msra.mxu1 %v1505_v54  ;;  %v1715_v58 = vpack.c.bf16 %v141_v61, %v134_v56  ;;  %v636_v19 = vld [vmem:[#allocation7 + $0x288] sm:$0xff]  ;;  %v665_v35 = vld [vmem:[#allocation7 + $0x370] sm:$0xff] }
  0x99   :  { %830 = vmatpush.msra.mxu2 %v1509_v49  ;;  %850 = vmatpush.msra.mxu3 %v1511_v55  ;;  %v1717_v54 = vpack.c.bf16 %v155_v36, %v148_v63  ;;  %v668_v22 = vld [vmem:[#allocation7 + $0x388] sm:$0xff] }
  0x9a   :  { %791 = vmatpush.msra.mxu0 %v1515_v57  ;;  %811 = vmatpush.msra.mxu1 %v1517_v62  ;;  %v685_v49 = vunpack.c.l.bf16 %v1715_v58  ;;  %v686_v57 = vunpack.c.h.bf16 %v1715_v58  ;;  %v632_v58 = vld [vmem:[#allocation7 + $0x268] sm:$0xff] }
  0x9b   :  { %831 = vmatpush.msra.mxu2 %v1521_v52  ;;  %851 = vmatpush.msra.mxu3 %v1523_v59  ;;  %v687_v55 = vunpack.c.l.bf16 %v1717_v54  ;;  %v688_v62 = vunpack.c.h.bf16 %v1717_v54  ;;  %v664_v54 = vld [vmem:[#allocation7 + $0x368] sm:$0xff] }
  0x9c   :  { %792 = vmatpush.msra.mxu0 %v1527_v60  ;;  %812 = vmatpush.msra.mxu1 %v1529_v0  ;;  %v689_v52 = vsub.f32 %v134_v56, %v685_v49  ;;  %v1870_v60 = vld [vmem:[#allocation12_spill] sm:$0xff]  ;;  %v1871_v0 = vld [vmem:[#allocation13_spill] sm:$0xff] }
  0x9d   :  { %832 = vmatpush.msra.mxu2 %v1533_v1  ;;  %852 = vmatpush.msra.mxu3 %v1535_v2  ;;  %v691_v59 = vsub.f32 %v148_v63, %v687_v55  ;;  %v1872_v1 = vld [vmem:[#allocation14_spill] sm:$0xff]  ;;  %v1873_v2 = vld [vmem:[#allocation17_spill] sm:$0xff] }
  0x9e   :  { %793 = vmatpush.msra.mxu0 %v1539_v3  ;;  %813 = vmatpush.msra.mxu1 %v1541_v4  ;;  %v690_v3 = vsub.f32 %v141_v61, %v686_v57  ;;  %v692_v4 = vsub.f32 %v155_v36, %v688_v62  ;;  %v634_v56 = vld [vmem:[#allocation7 + $0x278] sm:$0xff]  ;;  %v631_v63 = vld [vmem:[#allocation7 + $0x260] sm:$0xff] }
  0x9f   :  { %833 = vmatpush.msra.mxu2 %v1545_v5  ;;  %853 = vmatpush.msra.mxu3 %v1547_v46  ;;  %v697_v5 = vsel %vm298_vm2, %v691_v59, %v689_v52  ;;  %v1874_v46 = vld [vmem:[#allocation18_spill] sm:$0xff]  ;;  %v666_v61 = vld [vmem:[#allocation7 + $0x378] sm:$0xff] }
  0xa0   :  { %794 = vmatpush.msra.mxu0 %v1551_v6  ;;  %814 = vmatpush.msra.mxu1 %v1553_v7  ;;  %v1875_v6 = vld [vmem:[#allocation19_spill] sm:$0xff]  ;;  %v1876_v7 = vld [vmem:[#allocation20_spill] sm:$0xff]  ;;  %v663_v36 = vld [vmem:[#allocation7 + $0x360] sm:$0xff] }
  0xa1   :  { %834 = vmatpush.msra.mxu2 %v1557_v8  ;;  %854 = vmatpush.msra.mxu3 %v1559_v9  ;;  %v698_v8 = vsel %vm298_vm2, %v692_v4, %v690_v3  ;;  %v1877_v9 = vld [vmem:[#allocation21_spill] sm:$0xff]  ;;  %v627_v52 = vld [vmem:[#allocation7 + $0x240] sm:$0xff] }
  0xa2   :  { %795 = vmatpush.msra.mxu0 %v1561_v10  ;;  %815 = vmatpush.msra.mxu1 %v1565_v11  ;;  %v1878_v10 = vld [vmem:[#allocation22_spill] sm:$0xff]  ;;  %v1879_v11 = vld [vmem:[#allocation23_spill] sm:$0xff]  ;;  %v626_v3 = vld [vmem:[#allocation7 + $0x238] sm:$0xff] }
  0xa3   :  { %835 = vmatpush.msra.mxu2 %v1567_v12  ;;  %855 = vmatpush.msra.mxu3 %v1569_v13  ;;  %v1880_v12 = vld [vmem:[#allocation24_spill] sm:$0xff]  ;;  %v1881_v13 = vld [vmem:[#allocation25_spill] sm:$0xff]  ;;  %v659_v59 = vld [vmem:[#allocation7 + $0x340] sm:$0xff] }
  0xa4   :  { %796 = vmatpush.msra.mxu0 %v1573_v47  ;;  %816 = vmatpush.msra.mxu1 %v1575_v14  ;;  %v649_v47 = vld [vmem:[#allocation7 + $0x2f0] sm:$0xff]  ;;  %v658_v4 = vld [vmem:[#allocation7 + $0x338] sm:$0xff] }
  0xa5   :  { %836 = vmatpush.msra.mxu2 %v1577_v15  ;;  %856 = vmatpush.msra.mxu3 %v1581_v16  ;;  %v681_v14 = vld [vmem:[#allocation7 + $0x3f0] sm:$0xff]  ;;  %v650_v15 = vld [vmem:[#allocation7 + $0x2f8] sm:$0xff] }
  0xa6   :  { %797 = vmatpush.msra.mxu0 %v1583_v17  ;;  %817 = vmatpush.msra.mxu1 %v1585_v18  ;;  %v682_v16 = vld [vmem:[#allocation7 + $0x3f8] sm:$0xff]  ;;  %v1766_v17 = vsel %vm298_vm2, %v687_v55, %v685_v49  ;;  %v647_v18 = vld [vmem:[#allocation7 + $0x2e0] sm:$0xff]  ;;  %v629_v49 = vld [vmem:[#allocation7 + $0x250] sm:$0xff] }
  0xa7   :  { %837 = vmatpush.msra.mxu2 %v1593_v23  ;;  %857 = vmatpush.msra.mxu3 %v1595_v24  ;;  %v679_v23 = vld [vmem:[#allocation7 + $0x3e0] sm:$0xff]  ;;  %v648_v24 = vld [vmem:[#allocation7 + $0x2e8] sm:$0xff]  ;;  %v661_v55 = vld [vmem:[#allocation7 + $0x350] sm:$0xff] }
  0xa8   :  { %798 = vmatpush.msra.mxu0 %v1599_v25  ;;  %818 = vmatpush.msra.mxu1 %v1601_v26  ;;  %v680_v25 = vld [vmem:[#allocation7 + $0x3e8] sm:$0xff]  ;;  %v645_v26 = vld [vmem:[#allocation7 + $0x2d0] sm:$0xff] }
  0xa9   :  { %838 = vmatpush.msra.mxu2 %v1606_v28  ;;  %858 = vmatpush.msra.mxu3 %v1608_v29  ;;  %v1770_v28 = vsel %vm298_vm2, %v688_v62, %v686_v57  ;;  %v677_v29 = vld [vmem:[#allocation7 + $0x3d0] sm:$0xff]  ;;  %v630_v57 = vld [vmem:[#allocation7 + $0x258] sm:$0xff] }
  0xaa   :  { %799 = vmatpush.msra.mxu0 %v1615_v33  ;;  %819 = vmatpush.msra.mxu1 %v1617_v34  ;;  %v646_v33 = vld [vmem:[#allocation7 + $0x2d8] sm:$0xff] }
  0xab   :  { %839 = vmatpush.msra.mxu2 %v1870_v60  ;;  %859 = vmatpush.msra.mxu3 %v1871_v0  ;;  %v678_v34 = vld [vmem:[#allocation7 + $0x3d8] sm:$0xff]  ;;  %v628_v60 = vld [vmem:[#allocation7 + $0x248] sm:$0xff] }
  0xac   :  { %800 = vmatpush.msra.mxu0 %v1872_v1  ;;  %820 = vmatpush.msra.mxu1 %v1873_v2  ;;  %v662_v62 = vld [vmem:[#allocation7 + $0x358] sm:$0xff]  ;;  %v660_v0 = vld [vmem:[#allocation7 + $0x348] sm:$0xff]  ;;  %v625_v1 = vld [vmem:[#allocation7 + $0x230] sm:$0xff] }
  0xad   :  { %840 = vmatpush.msra.mxu2 %v1633_v44  ;;  %860 = vmatpush.msra.mxu3 %v1635_v45  ;;  %v644_v44 = vld [vmem:[#allocation7 + $0x2c8] sm:$0xff]  ;;  %v657_v2 = vld [vmem:[#allocation7 + $0x330] sm:$0xff] }
  0xae   :  { %801 = vmatpush.msra.mxu0 %v1639_v48  ;;  %821 = vmatpush.msra.mxu1 %v1641_v50  ;;  %v676_v45 = vld [vmem:[#allocation7 + $0x3c8] sm:$0xff]  ;;  %v641_v48 = vld [vmem:[#allocation7 + $0x2b0] sm:$0xff] }
  0xaf   :  { %841 = vmatpush.msra.mxu2 %v1874_v46  ;;  %861 = vmatpush.msra.mxu3 %v1875_v6  ;;  %v673_v50 = vld [vmem:[#allocation7 + $0x3b0] sm:$0xff]  ;;  %v655_v46 = vld [vmem:[#allocation7 + $0x320] sm:$0xff]  ;;  %v624_v6 = vld [vmem:[#allocation7 + $0x228] sm:$0xff] }
  0xb0   :  { %757 = vmatmul.f32.vlgmr.msrb.gmra.mxu2 %v697_v5  ;;  %802 = vmatpush.msra.mxu0 %v1876_v7  ;;  %v656_v7 = vld [vmem:[#allocation7 + $0x328] sm:$0xff] }
  0xb1   :  { %822 = vmatpush.msra.mxu1 %v1877_v9  ;;  %842 = vmatpush.msra.mxu2 %v1878_v10  ;;  %v653_v9 = vld [vmem:[#allocation7 + $0x310] sm:$0xff]  ;;  %v622_v10 = vld [vmem:[#allocation7 + $0x218] sm:$0xff] }
  0xb2   :  { %862 = vmatpush.msra.mxu3 %v1879_v11  ;;  %803 = vmatpush.msra.mxu0 %v1880_v12  ;;  %v654_v11 = vld [vmem:[#allocation7 + $0x318] sm:$0xff]  ;;  %v619_v12 = vld [vmem:[#allocation7 + $0x200] sm:$0xff] }
  0xb3   :  { %777 = vmatmul.f32.vlgmr.msrb.gmra.mxu3 %v698_v8  ;;  %823 = vmatpush.msra.mxu1 %v1881_v13  ;;  %v651_v13 = vld [vmem:[#allocation7 + $0x300] sm:$0xff] }
  0xb4   :  { %843 = vmatpush.msra.mxu2 %v1669_v30  ;;  %863 = vmatpush.msra.mxu3 %v1671_v31  ;;  %v637_v30 = vld [vmem:[#allocation7 + $0x290] sm:$0xff] }
  0xb5   :  { %804 = vmatpush.msra.mxu0 %v1675_v41  ;;  %824 = vmatpush.msra.mxu1 %v1677_v42  ;;  %v669_v31 = vld [vmem:[#allocation7 + $0x390] sm:$0xff]  ;;  %v670_v41 = vld [vmem:[#allocation7 + $0x398] sm:$0xff]  ;;  %v635_v42 = vld [vmem:[#allocation7 + $0x280] sm:$0xff] }
  0xb6   :  { %844 = vmatpush.msra.mxu2 %v1681_v21  ;;  %864 = vmatpush.msra.mxu3 %v1683_v20  ;;  %v671_v20 = vld [vmem:[#allocation7 + $0x3a0] sm:$0xff] }
  0xb7   :  { %717 = vmatmul.f32.vlgmr.msrb.gmra.mxu0 %v697_v5  ;;  %737 = vmatmul.f32.vlgmr.msrb.gmra.mxu1 %v698_v8  ;;  %v639_v21 = vld [vmem:[#allocation7 + $0x2a0] sm:$0xff]  ;;  %v621_v8 = vld [vmem:[#allocation7 + $0x210] sm:$0xff] }
  0xb8   :  { %869 = vmatpush.msrb.mxu0 %v649_v47  ;;  %889 = vmatpush.msrb.mxu1 %v681_v14  ;;  %v623_v5 = vld [vmem:[#allocation7 + $0x220] sm:$0xff]  ;;  %v620_v47 = vld [vmem:[#allocation7 + $0x208] sm:$0xff] }
  0xb9   :  { %909 = vmatpush.msrb.mxu2 %v650_v15  ;;  %929 = vmatpush.msrb.mxu3 %v682_v16  ;;  %v652_v14 = vld [vmem:[#allocation7 + $0x308] sm:$0xff] }
  0xba   :  { %845 = vmatmul.f32.vlgmr.msra.gmra.mxu2 %v1766_v17  ;;  %870 = vmatpush.msrb.mxu0 %v647_v18 }
  0xbb   :  { %890 = vmatpush.msrb.mxu1 %v679_v23  ;;  %910 = vmatpush.msrb.mxu2 %v648_v24 }
  0xbc   :  { %930 = vmatpush.msrb.mxu3 %v680_v25  ;;  %871 = vmatpush.msrb.mxu0 %v645_v26 }
  0xbd   :  { %865 = vmatmul.f32.vlgmr.msra.gmra.mxu3 %v1770_v28  ;;  %891 = vmatpush.msrb.mxu1 %v677_v29 }
  0xbe   :  { %911 = vmatpush.msrb.mxu2 %v646_v33  ;;  %931 = vmatpush.msrb.mxu3 %v678_v34 }
  0xbf   :  { %872 = vmatpush.msrb.mxu0 %v643_v39  ;;  %892 = vmatpush.msrb.mxu1 %v675_v40 }
  0xc0   :  { %912 = vmatpush.msrb.mxu2 %v644_v44  ;;  %932 = vmatpush.msrb.mxu3 %v676_v45 }
  0xc1   :  { %873 = vmatpush.msrb.mxu0 %v641_v48  ;;  %893 = vmatpush.msrb.mxu1 %v673_v50 }
  0xc2   :  { %913 = vmatpush.msrb.mxu2 %v642_v51  ;;  %933 = vmatpush.msrb.mxu3 %v674_v53 }
  0xc3   :  { %805 = vmatmul.f32.vlgmr.msra.gmra.mxu0 %v1766_v17  ;;  %894 = vmatpush.msrb.mxu1 %v671_v20 }
  0xc4   :  { %874 = vmatpush.msrb.mxu0 %v639_v21  ;;  %914 = vmatpush.msrb.mxu2 %v640_v27 }
  0xc5   :  { %934 = vmatpush.msrb.mxu3 %v672_v38  ;;  %825 = vmatmul.f32.vlgmr.msra.gmra.mxu1 %v1770_v28 }
  0xc6   :  { %875 = vmatpush.msrb.mxu0 %v637_v30  ;;  %895 = vmatpush.msrb.mxu1 %v669_v31 }
  0xc7   :  { %915 = vmatpush.msrb.mxu2 %v638_v32  ;;  %935 = vmatpush.msrb.mxu3 %v670_v41 }
  0xc8   :  { %876 = vmatpush.msrb.mxu0 %v635_v42  ;;  %896 = vmatpush.msrb.mxu1 %v667_v43 }
  0xc9   :  { %916 = vmatpush.msrb.mxu2 %v636_v19  ;;  %936 = vmatpush.msrb.mxu3 %v668_v22 }
  0xca   :  { %877 = vmatpush.msrb.mxu0 %v633_v37  ;;  %897 = vmatpush.msrb.mxu1 %v665_v35 }
  0xcb   :  { %917 = vmatpush.msrb.mxu2 %v634_v56  ;;  %937 = vmatpush.msrb.mxu3 %v666_v61 }
  0xcc   :  { %878 = vmatpush.msrb.mxu0 %v631_v63  ;;  %898 = vmatpush.msrb.mxu1 %v663_v36 }
  0xcd   :  { %918 = vmatpush.msrb.mxu2 %v632_v58  ;;  %938 = vmatpush.msrb.mxu3 %v664_v54  ;;  %v360_v18 = vpop.f32.mrf.mxu2 }
  0xce   :  { %879 = vmatpush.msrb.mxu0 %v629_v49  ;;  %899 = vmatpush.msrb.mxu1 %v661_v55  ;;  %v320_v15 = vpop.f32.mrf.mxu0  ;;  %v340_v16 = vpop.f32.mrf.mxu1 }
  0xcf   :  { %919 = vmatpush.msrb.mxu2 %v630_v57  ;;  %939 = vmatpush.msrb.mxu3 %v662_v62  ;;  %v341_v53 = vadd.f32 %v340_v16, %v320_v15 }
  0xd0   :  { %880 = vmatpush.msrb.mxu0 %v627_v52  ;;  %900 = vmatpush.msrb.mxu1 %v659_v59  ;;  %v380_v23 = vpop.f32.mrf.mxu3 }
  0xd1   :  { %920 = vmatpush.msrb.mxu2 %v628_v60  ;;  %940 = vmatpush.msrb.mxu3 %v660_v0  ;;  %v381_v31 = vadd.f32 %v380_v23, %v360_v18 }
  0xd2   :  { %881 = vmatpush.msrb.mxu0 %v625_v1  ;;  %901 = vmatpush.msrb.mxu1 %v657_v2 }
  0xd3   :  { %921 = vmatpush.msrb.mxu2 %v626_v3  ;;  %941 = vmatpush.msrb.mxu3 %v658_v4 }
  0xd4   :  { %882 = vmatpush.msrb.mxu0 %v623_v5  ;;  %902 = vmatpush.msrb.mxu1 %v655_v46 }
  0xd5   :  { %922 = vmatpush.msrb.mxu2 %v624_v6  ;;  %942 = vmatpush.msrb.mxu3 %v656_v7 }
  0xd6   :  { %883 = vmatpush.msrb.mxu0 %v621_v8  ;;  %903 = vmatpush.msrb.mxu1 %v653_v9 }
  0xd7   :  { %923 = vmatpush.msrb.mxu2 %v622_v10  ;;  %943 = vmatpush.msrb.mxu3 %v654_v11  ;;  %v448_v26 = vpop.f32.mrf.mxu2 }
  0xd8   :  { %884 = vmatpush.msrb.mxu0 %v619_v12  ;;  %904 = vmatpush.msrb.mxu1 %v651_v13  ;;  %v449_v56 = vadd.f32 %v448_v26, %v381_v31 }
  0xd9   :  { %924 = vmatpush.msrb.mxu2 %v620_v47  ;;  %944 = vmatpush.msrb.mxu3 %v652_v14 }
  0xda   :  { %885 = vmatmul.f32.vlgmr.msrb.gmra.mxu0 %v1766_v17  ;;  %905 = vmatmul.f32.vlgmr.msrb.gmra.mxu1 %v1770_v28  ;;  %v408_v24 = vpop.f32.mrf.mxu0  ;;  %v468_v29 = vpop.f32.mrf.mxu3 }
  0xdb   :  { %925 = vmatmul.f32.vlgmr.msrb.gmra.mxu2 %v1766_v17  ;;  %945 = vmatmul.f32.vlgmr.msrb.gmra.mxu3 %v1770_v28  ;;  %v409_v20 = vadd.f32 %v408_v24, %v341_v53  ;;  %v469_v55 = vadd.f32 %v468_v29, %v449_v56 }
  0xdc   :  { %v428_v25 = vpop.f32.mrf.mxu1 }
  0xdd   :  { %v429_v43 = vadd.f32 %v428_v25, %v409_v20 }
  0xf1   :  { %v488_v33 = vpop.f32.mrf.mxu0  ;;  %v508_v34 = vpop.f32.mrf.mxu1 }
  0xf2   :  { %v509_v27 = vadd.f32 %v508_v34, %v488_v33 }
  0xf4   :  { %v551_v37 = vadd.f32 %v509_v27, %v429_v43  ;;  %v1883_v27 = vld [vmem:[#allocation16_spill] sm:$0xff] }
  0xf8   :  { %v528_v39 = vpop.f32.mrf.mxu2  ;;  %v548_v40 = vpop.f32.mrf.mxu3 }
  0xf9   :  { %v549_v36 = vadd.f32 %v548_v40, %v528_v39 }
  0xfb   :  { %v552_v52 = vadd.f32 %v549_v36, %v469_v55 }
 0x133   :  { %v758_v48 = vpop.f32.mrf.mxu2 }
 0x134   :  { %v718_v44 = vpop.f32.mrf.mxu0  ;;  %v738_v45 = vpop.f32.mrf.mxu1 }
 0x135   :  { %v739_v28 = vadd.f32 %v738_v45, %v718_v44 }
 0x136   :  { %v778_v50 = vpop.f32.mrf.mxu3 }
 0x137   :  { %v779_v32 = vadd.f32 %v778_v50, %v758_v48 }
 0x13d   :  { %v846_v38 = vpop.f32.mrf.mxu2 }
 0x13e   :  { %v847_v61 = vadd.f32 %v846_v38, %v779_v32 }
 0x140   :  { %v806_v51 = vpop.f32.mrf.mxu0  ;;  %v866_v30 = vpop.f32.mrf.mxu3 }
 0x141   :  { %v807_v21 = vadd.f32 %v806_v51, %v739_v28  ;;  %v867_v57 = vadd.f32 %v866_v30, %v847_v61  ;;  %v1882_v28 = vld [vmem:[#allocation15_spill] sm:$0xff] }
 0x142   :  { %v826_v17 = vpop.f32.mrf.mxu1 }
 0x143   :  { %v827_v19 = vadd.f32 %v826_v17, %v807_v21 }
 0x157   :  { %v886_v41 = vpop.f32.mrf.mxu0  ;;  %v906_v42 = vpop.f32.mrf.mxu1 }
 0x158   :  { %v907_v22 = vadd.f32 %v906_v42, %v886_v41 }
 0x15a   :  { %v949_v35 = vadd.f32 %v907_v22, %v827_v19 }
 0x15c   :  { %v951_v63 = vadd.f32 %v949_v35, %v551_v37 }
 0x15e   :  { %v1032_v58 = vmul.f32 -1.442695, %v951_v63  ;;  %v926_v54 = vpop.f32.mrf.mxu2  ;;  %v946_v49 = vpop.f32.mrf.mxu3 }
 0x15f   :  { %v947_v62 = vadd.f32 %v946_v49, %v926_v54 }
 0x160   :  { %1045 = vpow2.f32 %v1032_v58 }
 0x161   :  { %v950_v59 = vadd.f32 %v947_v62, %v867_v57 }
 0x163   :  { %v952_v60 = vadd.f32 %v950_v59, %v552_v52 }
 0x165   :  { %v1033_v0 = vmul.f32 -1.442695, %v952_v60 }
 0x166   :  { %v1046_v1 = vpop.eup %1045 }
 0x167   :  { %v959_v2 = vadd.f32 1.0, %v1046_v1  ;;  %1047 = vpow2.f32 %v1033_v0 }
 0x169   :  { %1049 = vrcp.f32 %v959_v2  ;;  %vm966_vm5 = vweird.f32 %v959_v2  ;;  %v972_v14 = vand.u32 2147483648, %v959_v2  ;;  %v970_v16 = vand.u32 2147483647, %v959_v2 }
 0x16b   :  { %v973_v25 = vor.u32 1.1754944e-38, %v972_v14  ;;  %vm971_vm11 = vcmp.eq.f32.partialorder %v970_v16, 8.507059e+37 }
 0x16d   :  { %v1048_v3 = vpop.eup %1047 }
 0x16e   :  { %v960_v4 = vadd.f32 1.0, %v1048_v3 }
 0x16f   :  { %v1050_v5 = vpop.eup %1049 }
 0x170   :  { %v962_v46 = vmul.f32 %v1050_v5, %v959_v2  ;;  %1051 = vrcp.f32 %v960_v4  ;;  %vm967_vm3 = vweird.f32 %v1050_v5  ;;  %v987_v11 = vand.u32 2147483648, %v960_v4 }
 0x171   :  { %v985_v13 = vand.u32 2147483647, %v960_v4  ;;  %vm968_vm6 = vmor %vm966_vm5, %vm967_vm3  ;;  %vm981_vm7 = vweird.f32 %v960_v4 }
 0x172   :  { %v963_v6 = vsub.f32 1.0, %v962_v46  ;;  %v988_v18 = vor.u32 1.1754944e-38, %v987_v11 }
 0x173   :  { %vm986_vm9 = vcmp.eq.f32.partialorder %v985_v13, 8.507059e+37 }
 0x174   :  { %v964_v8 = vmul.f32 %v1050_v5, %v963_v6 }
 0x176   :  { %v1052_v7 = vpop.eup %1051  ;;  %v965_v47 = vadd.f32 %v1050_v5, %v964_v8 }
 0x177   :  { %v977_v9 = vmul.f32 %v1052_v7, %v960_v4  ;;  %vm982_vm4 = vweird.f32 %v1052_v7 }
 0x178   :  { %vm983_vm8 = vmor %vm981_vm7, %vm982_vm4  ;;  %v969_v23 = vsel %vm968_vm6, %v1050_v5, %v965_v47 }
 0x179   :  { %v978_v10 = vsub.f32 1.0, %v977_v9  ;;  %v974_v33 = vsel %vm971_vm11, %v973_v25, %v969_v23 }
 0x17b   :  { %v979_v12 = vmul.f32 %v1052_v7, %v978_v10 }
 0x17d   :  { %v980_v15 = vadd.f32 %v1052_v7, %v979_v12 }
 0x17f   :  { %v984_v24 = vsel %vm983_vm8, %v1052_v7, %v980_v15 }
 0x180   :  { %v989_v26 = vsel %vm986_vm9, %v988_v18, %v984_v24 }
 0x181   :  { %v993_v29 = vrot.slane %v989_v26, 7 }
 0x183   :  { %v995_v34 = vsel %vm994_vm10, %v974_v33, %v993_v29  ;;  %v996_v39 = vsel %vm298_vm2, %v974_v33, %v993_v29 }
 0x184   :  { %v997_v40 = vrot.slane %v996_v39, 1  ;;  %v999_v44 = vperm.slane %v995_v34, 1  ;;  %v998_v45 = vperm.slane %v995_v34, 0 }
 0x186   :  { %v1001_v48 = vperm.slane %v997_v40, 1  ;;  %v1002_v50 = vrot.slane %v999_v44, 4  ;;  %v1000_v51 = vperm.slane %v997_v40, 0 }
 0x188   :  { %v1003_v17 = vrot.slane %v1001_v48, 4  ;;  %v1004_v53 = vsel %vm77_vm0, %v998_v45, %v1002_v50 }
 0x189   :  { %v1008_v20 = vmul.f32 %v1004_v53, %v1882_v28 }
 0x18a   :  { %v1005_v21 = vsel %vm77_vm0, %v1000_v51, %v1003_v17 }
 0x18b   :  { %v1009_v38 = vmul.f32 %v1005_v21, %v1883_v27  ;;  %1010 = vst [vmem:[#allocation8] sm:$0xff] %v1008_v20 }
 0x18d   :  { %1011 = vst [vmem:[#allocation8 + $0x8] sm:$0xff] %v1009_v38 }
 0x18e   :  { %1024 = dma.vmem_to_hbm [thread:$0]  %s1017_s29, 256, %s1019_s5, [#allocation4], %s1159_s24, %s1159_s24, %s1160_s25  }
 0x18f   :  { %1153 = dma.done.wait [#allocation4], 256  }
 0x190   :  { %1154 = vsyncadd [#allocation4], 4294967040 }
 0x191   :  { %1029 = vsyncpa [#allocation3], 1 }
 0x192   :  { %1030 = vsyncpa [#allocation6], 1 }
 0x193   :  { %1031 = vsyncpa [#allocation4], 1 }

</bundles_post_ra>
